<compile_context>
chip_gen: v7x
topology: tpu7x:2x2x1
jax: 0.10.0
libtpu: 0.0.40
codegen_flags: <defaults>
</compile_context>

<pallas_src>
import functools

import jax
import jax.numpy as jnp
import numpy as np
from jax import lax
from jax.experimental import pallas as pl
from jax.experimental.pallas import tpu as pltpu

NEG_SLOPE = 0.02        # GraphEncoder uses nn.LeakyReLU(0.02), not the 0.01 default.
BN_EPS = 1e-5


# ----------------------------- packed-weight layout ---------------------------

def _round8(n):
    return n + (-n) % 8


def make_layout(cins, C):
    """Row layout of the single packed weight array (every chunk 8-row aligned
    so all in-kernel slices start on a sublane-tile boundary)."""
    lay, off = {}, 0

    def add(name, n):
        nonlocal off
        lay[name] = (off, n)
        off += _round8(n)

    for bi, cin in enumerate(cins):
        add(f"b{bi}_wa_x", cin)          # x        -> [br1 | h2 | h3 | 0  ]
        add(f"b{bi}_wa_p", cin)          # maxpool3 -> [0   | 0  | 0  | br4]
        add(f"b{bi}_ba", 1)
        for nm in ("wb_s0", "wb_m1", "wb_p1", "wb_m2", "wb_p2"):
            add(f"b{bi}_{nm}", C)        # per-shift [C, C] stage-B weights
        add(f"b{bi}_bb", 1)
    add("proj_w", C)
    add("proj_b", 1)
    lay["_total"] = off
    return lay


def pack_graph_encoder_params(params, in_dim, hidden):
    """Pack every conv/BN-folded weight, bias and the output projection into
    ONE [rows, hidden] f32 array (single prologue DMA, no per-bias tile pad)."""
    C, c4 = hidden, hidden // 4
    cins = (in_dim, hidden, hidden)
    lay = make_layout(cins, C)
    W = jnp.zeros((lay["_total"], C), jnp.float32)

    def put(W, name, arr):
        off, n = lay[name]
        assert arr.shape == (n, C), (name, arr.shape)
        return W.at[off:off + n, :].set(arr)

    eye = jnp.eye(c4, dtype=jnp.float32)
    for bi, (blk, cin) in enumerate(zip(("inc1", "inc2", "inc3"), cins)):
        p = params[blk]
        # Stage A: the four 1x1 convs as TWO matmuls (x path and maxpool path).
        wa_x = jnp.zeros((cin, C), jnp.float32)
        wa_x = wa_x.at[:, 0:c4].set(p["w1"][0])
        wa_x = wa_x.at[:, c4:2 * c4].set(p["w2a"][0])
        wa_x = wa_x.at[:, 2 * c4:3 * c4].set(p["w3a"][0])
        wa_p = jnp.zeros((cin, C), jnp.float32).at[:, 3 * c4:].set(p["w4"][0])
        ba = jnp.concatenate([p["b1"], p["b2a"], p["b3a"], p["b4"]], axis=1)
        W = put(W, f"b{bi}_wa_x", wa_x)
        W = put(W, f"b{bi}_wa_p", wa_p)
        W = put(W, f"b{bi}_ba", ba)
        # Stage B: one [C, C] weight per row shift s in {0,-1,+1,-2,+2}.
        # 3-tap conv (pad 1) uses x[t+s] with w2b[s+1];
        # 5-tap conv (pad 2) uses x[t+s] with w3b[s+2];
        # br1 / br4 identity pass-through rides the centre tap.
        for nm, s in (("wb_s0", 0), ("wb_m1", -1), ("wb_p1", 1),
                      ("wb_m2", -2), ("wb_p2", 2)):
            wb = jnp.zeros((C, C), jnp.float32)
            if s == 0:
                wb = wb.at[0:c4, 0:c4].set(eye).at[3 * c4:, 3 * c4:].set(eye)
            if 0 <= s + 1 <= 2:
                wb = wb.at[c4:2 * c4, c4:2 * c4].set(p["w2b"][s + 1])
            if 0 <= s + 2 <= 4:
                wb = wb.at[2 * c4:3 * c4, 2 * c4:3 * c4].set(p["w3b"][s + 2])
            W = put(W, f"b{bi}_{nm}", wb)
        zb = jnp.zeros((1, c4), jnp.float32)
        W = put(W, f"b{bi}_bb",
                jnp.concatenate([zb, p["b2b"], p["b3b"], zb], axis=1))

    # TODO(synk): out_dim != hid_dim would need a wider column budget.
    assert params["proj_w_t"].shape == (C, C)
    W = put(W, "proj_w", params["proj_w_t"])
    W = put(W, "proj_b", params["proj_b"])
    return W


# ----------------------------- kernel -----------------------------------------

def _encoder_kernel(x_ref, w_ref, m_ref, p_ref, o_ref, *,
                    layout, C, n_blocks, compute_dtype):
    R = x_ref.shape[0]
    c4 = C // 4
    f32 = jnp.float32
    cdt = compute_dtype

    def wslab(name):
        off, n = layout[name]
        return w_ref[off:off + n, :]          # static, 8-row-aligned slice

    # ---- hoisted, data-independent constants (built once, reused 3x) --------
    mask = {-1: m_ref[:, 0:1], 1: m_ref[:, 1:2],
            -2: m_ref[:, 2:3], 2: m_ref[:, 3:4]}        # {0.,1.} column masks
    inv_m1 = 1.0 - mask[-1]
    inv_p1 = 1.0 - mask[1]
    lane = lax.broadcasted_iota(jnp.int32, (1, C), 1)
    # Stage-B epilogue LeakyReLU slope per lane: leaky on br2/br3, identity on
    # the already-activated br1/br4 pass-through lanes.
    slope_b = jnp.where(jnp.logical_and(lane >= c4, lane < 3 * c4),
                        f32(NEG_SLOPE), f32(1.0))

    def block(a, bi):
        pre = f"b{bi}_"
        a_c = a.astype(cdt)
        # MaxPool1d(k=3, s=1, p=1): out-of-segment taps fall back to the
        # centre value (max(x, x) = x), so no -inf is ever materialised.
        left = pltpu.roll(a, 1, axis=0) * mask[-1] + a * inv_m1     # a[r-1]
        right = pltpu.roll(a, R - 1, axis=0) * mask[1] + a * inv_p1  # a[r+1]
        xp = jnp.maximum(a, jnp.maximum(left, right)).astype(cdt)
        # Stage A: all four 1x1 convs as two matmuls (no [x | xp] lane concat).
        h = (jnp.dot(a_c, wslab(pre + "wa_x").astype(cdt),
                     preferred_element_type=f32)
             + jnp.dot(xp, wslab(pre + "wa_p").astype(cdt),
                       preferred_element_type=f32)
             + wslab(pre + "ba"))
        h = jnp.where(h >= 0, h, f32(NEG_SLOPE) * h)                # LeakyReLU
        # Stage B: 3-tap / 5-tap convs + identity pass-through as a SUM of
        # five [C, C] matmuls over shifted copies (no 160-lane concat, K <= C
        # per dot so even v5e's 128-wide MXU sees a single aligned pass).
        d = wslab(pre + "bb") + jnp.dot(h.astype(cdt),
                                        wslab(pre + "wb_s0").astype(cdt),
                                        preferred_element_type=f32)
        for s, nm in ((-1, "wb_m1"), (1, "wb_p1"), (-2, "wb_m2"), (2, "wb_p2")):
            hs = (pltpu.roll(h, (-s) % R, axis=0) * mask[s]).astype(cdt)
            d = d + jnp.dot(hs, wslab(pre + nm).astype(cdt),
                            preferred_element_type=f32)
        return jnp.where(d >= 0, d, d * slope_b)

    a = x_ref[...].astype(f32)
    for bi in range(n_blocks):
        a = block(a, bi)
    # Per-graph mean pool (precomputed [B_tile, rows] matrix) + output
    # projection; only the tiny [B_tile, H] result goes back to HBM.
    pooled = jnp.dot(p_ref[...].astype(cdt), a.astype(cdt),
                     preferred_element_type=f32)
    o_ref[...] = (jnp.dot(pooled.astype(cdt), wslab("proj_w").astype(cdt),
                          preferred_element_type=f32) + wslab("proj_b"))


# ----------------------------- wrapper -----------------------------------------

def _pick_batch_tile(B, L, row_cap):
    """Whole batch in one program if it fits the row cap, otherwise an
    8-aligned divisor of B (output-block sublane constraint)."""
    if B * L <= row_cap:
        return B
    bt = min(B, max(8, ((row_cap // max(L, 1)) // 8) * 8))
    while bt > 8 and B % bt:
        bt -= 8
    return bt if (bt >= 1 and B % bt == 0) else B


def feature_inception(x, w_all, *, compute_dtype=jnp.float32, row_tile_cap=1024):
    """Conv/BN/LeakyReLU inception feature stack + mean pool + linear head,
    fused into one Pallas kernel.  x: [B, in_dim] or [B, T, in_dim]."""
    if x.ndim == 2:
        x = x[:, None, :]
    B, L, Cin = x.shape
    C = w_all.shape[1]
    cins = (Cin, C, C)
    layout = make_layout(cins, C)
    assert w_all.shape[0] == layout["_total"]

    # Row tile per grid step; capped so live activations fit v7x's 64 MiB VMEM
    # at scaled sizes (v5e/v6e tolerate larger resident footprints).
    bt = _pick_batch_tile(B, L, row_tile_cap)
    rows = bt * L

    # Host-side (trace-time numpy) constants: segment-validity masks for the
    # +-1 / +-2 row shifts and the per-tile mean-pool matrix -> no in-kernel
    # iota / % / compares; identical for every grid step (broadcast blocks).
    pos = np.arange(rows) % L
    masks = np.stack([pos >= 1, pos <= L - 2, pos >= 2, pos <= L - 3],
                     axis=1).astype(np.float32)                     # [rows, 4]
    seg = np.repeat(np.arange(bt), L)
    pool = (np.arange(bt)[:, None] == seg[None, :]).astype(np.float32) / L

    xr = x.reshape(B * L, Cin)
    kernel = functools.partial(_encoder_kernel, layout=layout, C=C,
                               n_blocks=len(cins), compute_dtype=compute_dtype)
    return pl.pallas_call(
        kernel,
        out_shape=jax.ShapeDtypeStruct((B, C), jnp.float32),
        grid=(B // bt,),
        in_specs=[
            pl.BlockSpec((rows, Cin), lambda i: (i, 0)),    # activations (tiled)
            pl.BlockSpec(w_all.shape, lambda i: (0, 0)),    # packed weights
            pl.BlockSpec(masks.shape, lambda i: (0, 0)),    # shift masks
            pl.BlockSpec(pool.shape, lambda i: (0, 0)),     # mean-pool matrix
        ],
        out_specs=pl.BlockSpec((bt, C), lambda i: (i, 0)),
        compiler_params=pltpu.CompilerParams(
            dimension_semantics=("parallel",)),             # both TCs on v7x
    )(xr, w_all, jnp.asarray(masks), jnp.asarray(pool))


# ----------------------------- parameters --------------------------------------

def _fold_conv_bn(w, b, gamma, beta, mean, var, eps=BN_EPS):
    s = gamma / jnp.sqrt(var + eps)
    w_f = w * s[:, None, None]                       # [Cout, Cin, K]
    b_f = (b - mean) * s + beta                      # [Cout]
    return jnp.transpose(w_f, (2, 1, 0)), b_f.reshape(1, -1)   # [K,Cin,Cout], [1,Cout]


def _init_conv_bn(key, cin, cout, k):
    ks = jax.random.split(key, 6)
    w = 0.2 * jax.random.normal(ks[0], (cout, cin, k), jnp.float32)
    b = 0.1 * jax.random.normal(ks[1], (cout,), jnp.float32)
    gamma = 1.0 + 0.1 * jax.random.normal(ks[2], (cout,), jnp.float32)
    beta = 0.1 * jax.random.normal(ks[3], (cout,), jnp.float32)
    mean = 0.1 * jax.random.normal(ks[4], (cout,), jnp.float32)
    var = 0.5 + jax.random.uniform(ks[5], (cout,), jnp.float32)
    return _fold_conv_bn(w, b, gamma, beta, mean, var)


def init_inception_params(key, cin, cout):
    c4 = cout // 4
    ks = jax.random.split(key, 6)
    p = {}
    p["w1"], p["b1"] = _init_conv_bn(ks[0], cin, c4, 1)
    p["w2a"], p["b2a"] = _init_conv_bn(ks[1], cin, c4, 1)
    p["w2b"], p["b2b"] = _init_conv_bn(ks[2], c4, c4, 3)
    p["w3a"], p["b3a"] = _init_conv_bn(ks[3], cin, c4, 1)
    p["w3b"], p["b3b"] = _init_conv_bn(ks[4], c4, c4, 5)
    p["w4"], p["b4"] = _init_conv_bn(ks[5], cin, c4, 1)
    return p


# ----------------------------- pure-JAX reference ------------------------------

def _ref_conv1d(x, w, b, pad):
    K, L = w.shape[0], x.shape[1]
    xp = jnp.pad(x, ((0, 0), (pad, pad), (0, 0)))
    acc = jnp.zeros((x.shape[0], L, w.shape[2]), jnp.float32)
    for k in range(K):
        acc = acc + jnp.einsum("blc,cd->bld", xp[:, k:k + L], w[k])
    return acc + b


def _ref_maxpool3(x):
    L = x.shape[1]
    xp = jnp.pad(x, ((0, 0), (1, 1), (0, 0)), constant_values=-jnp.inf)
    return jnp.maximum(jnp.maximum(xp[:, 0:L], xp[:, 1:L + 1]), xp[:, 2:L + 2])


def _ref_block(x, p):
    lr = lambda v: jnp.where(v >= 0, v, NEG_SLOPE * v)
    b1 = lr(_ref_conv1d(x, p["w1"], p["b1"], 0))
    b2 = lr(_ref_conv1d(lr(_ref_conv1d(x, p["w2a"], p["b2a"], 0)), p["w2b"], p["b2b"], 1))
    b3 = lr(_ref_conv1d(lr(_ref_conv1d(x, p["w3a"], p["b3a"], 0)), p["w3b"], p["b3b"], 2))
    b4 = lr(_ref_conv1d(_ref_maxpool3(x), p["w4"], p["b4"], 0))
    return jnp.concatenate([b1, b2, b3, b4], axis=2)


def ref_feature_inception(x, params):
    if x.ndim == 2:
        x = x[:, None, :]
    x = _ref_block(x, params["inc1"])
    x = _ref_block(x, params["inc2"])
    x = _ref_block(x, params["inc3"])
    m = jnp.mean(x, axis=1)
    return m @ params["proj_w_t"] + params["proj_b"]


# ----------------------------- main --------------------------------------------

if __name__ == "__main__":
    B, L, IN_DIM, HIDDEN = 2, 16, 8, 32
    key = jax.random.PRNGKey(0)
    k_x, k_p = jax.random.split(key)
    x = jax.random.normal(k_x, (B, L, IN_DIM), jnp.float32)

    kp = jax.random.split(k_p, 5)
    params = {
        "inc1": init_inception_params(kp[0], IN_DIM, HIDDEN),
        "inc2": init_inception_params(kp[1], HIDDEN, HIDDEN),
        "inc3": init_inception_params(kp[2], HIDDEN, HIDDEN),
    }
    proj_w = 0.2 * jax.random.normal(kp[3], (HIDDEN, HIDDEN), jnp.float32)
    proj_b = 0.1 * jax.random.normal(kp[4], (HIDDEN,), jnp.float32)
    params["proj_w_t"] = proj_w.T                # Linear: y = m @ W.T + b
    params["proj_b"] = proj_b.reshape(1, HIDDEN)

    # One packed weight array -> one prologue DMA (semantics unchanged).
    w_all = pack_graph_encoder_params(params, IN_DIM, HIDDEN)

    out = jax.jit(feature_inception)(x, w_all)
    out = jax.block_until_ready(out)

    ref = ref_feature_inception(x, params)
    assert out.shape == (B, HIDDEN)
    # Tolerance note: the kernel's in-MXU f32 matmul path and XLA's default
    # f32 matmul precision for the reference are different rounding regimes on
    # TPU, so 2e-2 is kept as the cross-regime bound.  Any packing / indexing
    # mistake (wrong tap-to-shift, wrong lane/row offsets) produces O(0.1..1)
    # errors and is still caught.
    assert jnp.allclose(out, ref, rtol=2e-2, atol=2e-2), float(
        jnp.max(jnp.abs(out - ref)))

    print("KERNEL_OK")
</pallas_src>

<mosaic_0001>
module attributes {stable_mosaic.version = 11 : i64} {
  func.func @_encoder_kernel(%arg0: i32, %arg1: memref<32x8xf32, #tpu.memory_space<vmem>>, %arg2: memref<712x32xf32, #tpu.memory_space<vmem>>, %arg3: memref<32x4xf32, #tpu.memory_space<vmem>>, %arg4: memref<2x32xf32, #tpu.memory_space<vmem>>, %arg5: memref<2x32xf32, #tpu.memory_space<vmem>>) attributes {dimension_semantics = [#tpu.dimension_semantics<parallel>], iteration_bounds = array<i64: 1>, scalar_prefetch = 0 : i64, scratch_operands = 0 : i64, tpu.core_type = #tpu.core_type<tc>, window_params = [{transform_indices = @transform_0, window_bounds = array<i64: 32, 8>}, {pipeline_mode = #tpu.pipeline_mode<synchronous>, transform_indices = @transform_1, window_bounds = array<i64: 712, 32>}, {pipeline_mode = #tpu.pipeline_mode<synchronous>, transform_indices = @transform_2, window_bounds = array<i64: 32, 4>}, {pipeline_mode = #tpu.pipeline_mode<synchronous>, transform_indices = @transform_3, window_bounds = array<i64: 2, 32>}, {transform_indices = @transform_4, window_bounds = array<i64: 2, 32>}]} {
    %c0 = arith.constant 0 : index
    %c0_0 = arith.constant 0 : index
    %0 = vector.load %arg3[%c0, %c0_0] : memref<32x4xf32, #tpu.memory_space<vmem>>, vector<32x1xf32>
    %c0_1 = arith.constant 0 : index
    %c1 = arith.constant 1 : index
    %1 = vector.load %arg3[%c0_1, %c1] : memref<32x4xf32, #tpu.memory_space<vmem>>, vector<32x1xf32>
    %c0_2 = arith.constant 0 : index
    %c2 = arith.constant 2 : index
    %2 = vector.load %arg3[%c0_2, %c2] : memref<32x4xf32, #tpu.memory_space<vmem>>, vector<32x1xf32>
    %c0_3 = arith.constant 0 : index
    %c3 = arith.constant 3 : index
    %3 = vector.load %arg3[%c0_3, %c3] : memref<32x4xf32, #tpu.memory_space<vmem>>, vector<32x1xf32>
    %cst = arith.constant 1.000000e+00 : f32
    %4 = vector.broadcast %cst : f32 to vector<32x1xf32>
    %5 = arith.subf %4, %0 : vector<32x1xf32>
    %cst_4 = arith.constant 1.000000e+00 : f32
    %6 = vector.broadcast %cst_4 : f32 to vector<32x1xf32>
    %7 = arith.subf %6, %1 : vector<32x1xf32>
    %8 = tpu.iota {dimensions = array<i32: 1>} : vector<1x32xi32>
    %c8_i32 = arith.constant 8 : i32
    %9 = vector.broadcast %c8_i32 : i32 to vector<1x32xi32>
    %10 = arith.cmpi sge, %8, %9 : vector<1x32xi32>
    %c24_i32 = arith.constant 24 : i32
    %11 = vector.broadcast %c24_i32 : i32 to vector<1x32xi32>
    %12 = arith.cmpi slt, %8, %11 : vector<1x32xi32>
    %13 = arith.andi %10, %12 : vector<1x32xi1>
    %cst_5 = arith.constant 2.000000e-02 : f32
    %cst_6 = arith.constant 1.000000e+00 : f32
    %14 = vector.broadcast %cst_5 : f32 to vector<1x32xf32>
    %15 = vector.broadcast %cst_6 : f32 to vector<1x32xf32>
    %16 = arith.select %13, %14, %15 : vector<1x32xi1>, vector<1x32xf32>
    %c0_7 = arith.constant 0 : index
    %c0_8 = arith.constant 0 : index
    %17 = vector.load %arg1[%c0_7, %c0_8] : memref<32x8xf32, #tpu.memory_space<vmem>>, vector<32x8xf32>
    %c1_i32 = arith.constant 1 : i32
    %18 = tpu.dynamic_rotate %17 by %c1_i32 dim 0 : vector<32x8xf32>, i32 -> vector<32x8xf32>
    %19 = vector.broadcast %0 : vector<32x1xf32> to vector<32x8xf32>
    %20 = arith.mulf %18, %19 : vector<32x8xf32>
    %21 = vector.broadcast %5 : vector<32x1xf32> to vector<32x8xf32>
    %22 = arith.mulf %17, %21 : vector<32x8xf32>
    %23 = arith.addf %20, %22 : vector<32x8xf32>
    %c31_i32 = arith.constant 31 : i32
    %24 = tpu.dynamic_rotate %17 by %c31_i32 dim 0 : vector<32x8xf32>, i32 -> vector<32x8xf32>
    %25 = vector.broadcast %1 : vector<32x1xf32> to vector<32x8xf32>
    %26 = arith.mulf %24, %25 : vector<32x8xf32>
    %27 = vector.broadcast %7 : vector<32x1xf32> to vector<32x8xf32>
    %28 = arith.mulf %17, %27 : vector<32x8xf32>
    %29 = arith.addf %26, %28 : vector<32x8xf32>
    %30 = arith.maximumf %23, %29 : vector<32x8xf32>
    %31 = arith.maximumf %17, %30 : vector<32x8xf32>
    %c0_9 = arith.constant 0 : index
    %c0_10 = arith.constant 0 : index
    %32 = vector.load %arg2[%c0_9, %c0_10] : memref<712x32xf32, #tpu.memory_space<vmem>>, vector<8x32xf32>
    %cst_11 = arith.constant dense<0.000000e+00> : vector<32x32xf32>
    %33 = tpu.matmul %17, %32, %cst_11 {dimension_numbers = #tpu.dot_dimension_numbers<[1], [0], [0], [1], [0, 0, 1, 1], [], []>} : vector<32x8xf32>, vector<8x32xf32>, vector<32x32xf32> -> vector<32x32xf32>
    %c8 = arith.constant 8 : index
    %c0_12 = arith.constant 0 : index
    %34 = vector.load %arg2[%c8, %c0_12] : memref<712x32xf32, #tpu.memory_space<vmem>>, vector<8x32xf32>
    %cst_13 = arith.constant dense<0.000000e+00> : vector<32x32xf32>
    %35 = tpu.matmul %31, %34, %cst_13 {dimension_numbers = #tpu.dot_dimension_numbers<[1], [0], [0], [1], [0, 0, 1, 1], [], []>} : vector<32x8xf32>, vector<8x32xf32>, vector<32x32xf32> -> vector<32x32xf32>
    %36 = arith.addf %33, %35 : vector<32x32xf32>
    %c16 = arith.constant 16 : index
    %c0_14 = arith.constant 0 : index
    %37 = vector.load %arg2[%c16, %c0_14] : memref<712x32xf32, #tpu.memory_space<vmem>>, vector<1x32xf32>
    %38 = vector.broadcast %37 : vector<1x32xf32> to vector<32x32xf32>
    %39 = arith.addf %36, %38 : vector<32x32xf32>
    %cst_15 = arith.constant 0.000000e+00 : f32
    %40 = vector.broadcast %cst_15 : f32 to vector<32x32xf32>
    %41 = arith.cmpf oge, %39, %40 : vector<32x32xf32>
    %cst_16 = arith.constant 2.000000e-02 : f32
    %42 = vector.broadcast %cst_16 : f32 to vector<32x32xf32>
    %43 = arith.mulf %42, %39 : vector<32x32xf32>
    %44 = arith.select %41, %39, %43 : vector<32x32xi1>, vector<32x32xf32>
    %c184 = arith.constant 184 : index
    %c0_17 = arith.constant 0 : index
    %45 = vector.load %arg2[%c184, %c0_17] : memref<712x32xf32, #tpu.memory_space<vmem>>, vector<1x32xf32>
    %c24 = arith.constant 24 : index
    %c0_18 = arith.constant 0 : index
    %46 = vector.load %arg2[%c24, %c0_18] : memref<712x32xf32, #tpu.memory_space<vmem>>, vector<32x32xf32>
    %cst_19 = arith.constant dense<0.000000e+00> : vector<32x32xf32>
    %47 = tpu.matmul %44, %46, %cst_19 {dimension_numbers = #tpu.dot_dimension_numbers<[1], [0], [0], [1], [0, 0, 1, 1], [], []>} : vector<32x32xf32>, vector<32x32xf32>, vector<32x32xf32> -> vector<32x32xf32>
    %48 = vector.broadcast %45 : vector<1x32xf32> to vector<32x32xf32>
    %49 = arith.addf %48, %47 : vector<32x32xf32>
    %c1_i32_20 = arith.constant 1 : i32
    %50 = tpu.dynamic_rotate %44 by %c1_i32_20 dim 0 : vector<32x32xf32>, i32 -> vector<32x32xf32>
    %51 = vector.broadcast %0 : vector<32x1xf32> to vector<32x32xf32>
    %52 = arith.mulf %50, %51 : vector<32x32xf32>
    %c56 = arith.constant 56 : index
    %c0_21 = arith.constant 0 : index
    %53 = vector.load %arg2[%c56, %c0_21] : memref<712x32xf32, #tpu.memory_space<vmem>>, vector<32x32xf32>
    %cst_22 = arith.constant dense<0.000000e+00> : vector<32x32xf32>
    %54 = tpu.matmul %52, %53, %cst_22 {dimension_numbers = #tpu.dot_dimension_numbers<[1], [0], [0], [1], [0, 0, 1, 1], [], []>} : vector<32x32xf32>, vector<32x32xf32>, vector<32x32xf32> -> vector<32x32xf32>
    %55 = arith.addf %49, %54 : vector<32x32xf32>
    %c31_i32_23 = arith.constant 31 : i32
    %56 = tpu.dynamic_rotate %44 by %c31_i32_23 dim 0 : vector<32x32xf32>, i32 -> vector<32x32xf32>
    %57 = vector.broadcast %1 : vector<32x1xf32> to vector<32x32xf32>
    %58 = arith.mulf %56, %57 : vector<32x32xf32>
    %c88 = arith.constant 88 : index
    %c0_24 = arith.constant 0 : index
    %59 = vector.load %arg2[%c88, %c0_24] : memref<712x32xf32, #tpu.memory_space<vmem>>, vector<32x32xf32>
    %cst_25 = arith.constant dense<0.000000e+00> : vector<32x32xf32>
    %60 = tpu.matmul %58, %59, %cst_25 {dimension_numbers = #tpu.dot_dimension_numbers<[1], [0], [0], [1], [0, 0, 1, 1], [], []>} : vector<32x32xf32>, vector<32x32xf32>, vector<32x32xf32> -> vector<32x32xf32>
    %61 = arith.addf %55, %60 : vector<32x32xf32>
    %c2_i32 = arith.constant 2 : i32
    %62 = tpu.dynamic_rotate %44 by %c2_i32 dim 0 : vector<32x32xf32>, i32 -> vector<32x32xf32>
    %63 = vector.broadcast %2 : vector<32x1xf32> to vector<32x32xf32>
    %64 = arith.mulf %62, %63 : vector<32x32xf32>
    %c120 = arith.constant 120 : index
    %c0_26 = arith.constant 0 : index
    %65 = vector.load %arg2[%c120, %c0_26] : memref<712x32xf32, #tpu.memory_space<vmem>>, vector<32x32xf32>
    %cst_27 = arith.constant dense<0.000000e+00> : vector<32x32xf32>
    %66 = tpu.matmul %64, %65, %cst_27 {dimension_numbers = #tpu.dot_dimension_numbers<[1], [0], [0], [1], [0, 0, 1, 1], [], []>} : vector<32x32xf32>, vector<32x32xf32>, vector<32x32xf32> -> vector<32x32xf32>
    %67 = arith.addf %61, %66 : vector<32x32xf32>
    %c30_i32 = arith.constant 30 : i32
    %68 = tpu.dynamic_rotate %44 by %c30_i32 dim 0 : vector<32x32xf32>, i32 -> vector<32x32xf32>
    %69 = vector.broadcast %3 : vector<32x1xf32> to vector<32x32xf32>
    %70 = arith.mulf %68, %69 : vector<32x32xf32>
    %c152 = arith.constant 152 : index
    %c0_28 = arith.constant 0 : index
    %71 = vector.load %arg2[%c152, %c0_28] : memref<712x32xf32, #tpu.memory_space<vmem>>, vector<32x32xf32>
    %cst_29 = arith.constant dense<0.000000e+00> : vector<32x32xf32>
    %72 = tpu.matmul %70, %71, %cst_29 {dimension_numbers = #tpu.dot_dimension_numbers<[1], [0], [0], [1], [0, 0, 1, 1], [], []>} : vector<32x32xf32>, vector<32x32xf32>, vector<32x32xf32> -> vector<32x32xf32>
    %73 = arith.addf %67, %72 : vector<32x32xf32>
    %cst_30 = arith.constant 0.000000e+00 : f32
    %74 = vector.broadcast %cst_30 : f32 to vector<32x32xf32>
    %75 = arith.cmpf oge, %73, %74 : vector<32x32xf32>
    %76 = vector.broadcast %16 : vector<1x32xf32> to vector<32x32xf32>
    %77 = arith.mulf %73, %76 : vector<32x32xf32>
    %78 = arith.select %75, %73, %77 : vector<32x32xi1>, vector<32x32xf32>
    %c1_i32_31 = arith.constant 1 : i32
    %79 = tpu.dynamic_rotate %78 by %c1_i32_31 dim 0 : vector<32x32xf32>, i32 -> vector<32x32xf32>
    %80 = vector.broadcast %0 : vector<32x1xf32> to vector<32x32xf32>
    %81 = arith.mulf %79, %80 : vector<32x32xf32>
    %82 = vector.broadcast %5 : vector<32x1xf32> to vector<32x32xf32>
    %83 = arith.mulf %78, %82 : vector<32x32xf32>
    %84 = arith.addf %81, %83 : vector<32x32xf32>
    %c31_i32_32 = arith.constant 31 : i32
    %85 = tpu.dynamic_rotate %78 by %c31_i32_32 dim 0 : vector<32x32xf32>, i32 -> vector<32x32xf32>
    %86 = vector.broadcast %1 : vector<32x1xf32> to vector<32x32xf32>
    %87 = arith.mulf %85, %86 : vector<32x32xf32>
    %88 = vector.broadcast %7 : vector<32x1xf32> to vector<32x32xf32>
    %89 = arith.mulf %78, %88 : vector<32x32xf32>
    %90 = arith.addf %87, %89 : vector<32x32xf32>
    %91 = arith.maximumf %84, %90 : vector<32x32xf32>
    %92 = arith.maximumf %78, %91 : vector<32x32xf32>
    %c192 = arith.constant 192 : index
    %c0_33 = arith.constant 0 : index
    %93 = vector.load %arg2[%c192, %c0_33] : memref<712x32xf32, #tpu.memory_space<vmem>>, vector<32x32xf32>
    %cst_34 = arith.constant dense<0.000000e+00> : vector<32x32xf32>
    %94 = tpu.matmul %78, %93, %cst_34 {dimension_numbers = #tpu.dot_dimension_numbers<[1], [0], [0], [1], [0, 0, 1, 1], [], []>} : vector<32x32xf32>, vector<32x32xf32>, vector<32x32xf32> -> vector<32x32xf32>
    %c224 = arith.constant 224 : index
    %c0_35 = arith.constant 0 : index
    %95 = vector.load %arg2[%c224, %c0_35] : memref<712x32xf32, #tpu.memory_space<vmem>>, vector<32x32xf32>
    %cst_36 = arith.constant dense<0.000000e+00> : vector<32x32xf32>
    %96 = tpu.matmul %92, %95, %cst_36 {dimension_numbers = #tpu.dot_dimension_numbers<[1], [0], [0], [1], [0, 0, 1, 1], [], []>} : vector<32x32xf32>, vector<32x32xf32>, vector<32x32xf32> -> vector<32x32xf32>
    %97 = arith.addf %94, %96 : vector<32x32xf32>
    %c256 = arith.constant 256 : index
    %c0_37 = arith.constant 0 : index
    %98 = vector.load %arg2[%c256, %c0_37] : memref<712x32xf32, #tpu.memory_space<vmem>>, vector<1x32xf32>
    %99 = vector.broadcast %98 : vector<1x32xf32> to vector<32x32xf32>
    %100 = arith.addf %97, %99 : vector<32x32xf32>
    %cst_38 = arith.constant 0.000000e+00 : f32
    %101 = vector.broadcast %cst_38 : f32 to vector<32x32xf32>
    %102 = arith.cmpf oge, %100, %101 : vector<32x32xf32>
    %cst_39 = arith.constant 2.000000e-02 : f32
    %103 = vector.broadcast %cst_39 : f32 to vector<32x32xf32>
    %104 = arith.mulf %103, %100 : vector<32x32xf32>
    %105 = arith.select %102, %100, %104 : vector<32x32xi1>, vector<32x32xf32>
    %c424 = arith.constant 424 : index
    %c0_40 = arith.constant 0 : index
    %106 = vector.load %arg2[%c424, %c0_40] : memref<712x32xf32, #tpu.memory_space<vmem>>, vector<1x32xf32>
    %c264 = arith.constant 264 : index
    %c0_41 = arith.constant 0 : index
    %107 = vector.load %arg2[%c264, %c0_41] : memref<712x32xf32, #tpu.memory_space<vmem>>, vector<32x32xf32>
    %cst_42 = arith.constant dense<0.000000e+00> : vector<32x32xf32>
    %108 = tpu.matmul %105, %107, %cst_42 {dimension_numbers = #tpu.dot_dimension_numbers<[1], [0], [0], [1], [0, 0, 1, 1], [], []>} : vector<32x32xf32>, vector<32x32xf32>, vector<32x32xf32> -> vector<32x32xf32>
    %109 = vector.broadcast %106 : vector<1x32xf32> to vector<32x32xf32>
    %110 = arith.addf %109, %108 : vector<32x32xf32>
    %c1_i32_43 = arith.constant 1 : i32
    %111 = tpu.dynamic_rotate %105 by %c1_i32_43 dim 0 : vector<32x32xf32>, i32 -> vector<32x32xf32>
    %112 = vector.broadcast %0 : vector<32x1xf32> to vector<32x32xf32>
    %113 = arith.mulf %111, %112 : vector<32x32xf32>
    %c296 = arith.constant 296 : index
    %c0_44 = arith.constant 0 : index
    %114 = vector.load %arg2[%c296, %c0_44] : memref<712x32xf32, #tpu.memory_space<vmem>>, vector<32x32xf32>
    %cst_45 = arith.constant dense<0.000000e+00> : vector<32x32xf32>
    %115 = tpu.matmul %113, %114, %cst_45 {dimension_numbers = #tpu.dot_dimension_numbers<[1], [0], [0], [1], [0, 0, 1, 1], [], []>} : vector<32x32xf32>, vector<32x32xf32>, vector<32x32xf32> -> vector<32x32xf32>
    %116 = arith.addf %110, %115 : vector<32x32xf32>
    %c31_i32_46 = arith.constant 31 : i32
    %117 = tpu.dynamic_rotate %105 by %c31_i32_46 dim 0 : vector<32x32xf32>, i32 -> vector<32x32xf32>
    %118 = vector.broadcast %1 : vector<32x1xf32> to vector<32x32xf32>
    %119 = arith.mulf %117, %118 : vector<32x32xf32>
    %c328 = arith.constant 328 : index
    %c0_47 = arith.constant 0 : index
    %120 = vector.load %arg2[%c328, %c0_47] : memref<712x32xf32, #tpu.memory_space<vmem>>, vector<32x32xf32>
    %cst_48 = arith.constant dense<0.000000e+00> : vector<32x32xf32>
    %121 = tpu.matmul %119, %120, %cst_48 {dimension_numbers = #tpu.dot_dimension_numbers<[1], [0], [0], [1], [0, 0, 1, 1], [], []>} : vector<32x32xf32>, vector<32x32xf32>, vector<32x32xf32> -> vector<32x32xf32>
    %122 = arith.addf %116, %121 : vector<32x32xf32>
    %c2_i32_49 = arith.constant 2 : i32
    %123 = tpu.dynamic_rotate %105 by %c2_i32_49 dim 0 : vector<32x32xf32>, i32 -> vector<32x32xf32>
    %124 = vector.broadcast %2 : vector<32x1xf32> to vector<32x32xf32>
    %125 = arith.mulf %123, %124 : vector<32x32xf32>
    %c360 = arith.constant 360 : index
    %c0_50 = arith.constant 0 : index
    %126 = vector.load %arg2[%c360, %c0_50] : memref<712x32xf32, #tpu.memory_space<vmem>>, vector<32x32xf32>
    %cst_51 = arith.constant dense<0.000000e+00> : vector<32x32xf32>
    %127 = tpu.matmul %125, %126, %cst_51 {dimension_numbers = #tpu.dot_dimension_numbers<[1], [0], [0], [1], [0, 0, 1, 1], [], []>} : vector<32x32xf32>, vector<32x32xf32>, vector<32x32xf32> -> vector<32x32xf32>
    %128 = arith.addf %122, %127 : vector<32x32xf32>
    %c30_i32_52 = arith.constant 30 : i32
    %129 = tpu.dynamic_rotate %105 by %c30_i32_52 dim 0 : vector<32x32xf32>, i32 -> vector<32x32xf32>
    %130 = vector.broadcast %3 : vector<32x1xf32> to vector<32x32xf32>
    %131 = arith.mulf %129, %130 : vector<32x32xf32>
    %c392 = arith.constant 392 : index
    %c0_53 = arith.constant 0 : index
    %132 = vector.load %arg2[%c392, %c0_53] : memref<712x32xf32, #tpu.memory_space<vmem>>, vector<32x32xf32>
    %cst_54 = arith.constant dense<0.000000e+00> : vector<32x32xf32>
    %133 = tpu.matmul %131, %132, %cst_54 {dimension_numbers = #tpu.dot_dimension_numbers<[1], [0], [0], [1], [0, 0, 1, 1], [], []>} : vector<32x32xf32>, vector<32x32xf32>, vector<32x32xf32> -> vector<32x32xf32>
    %134 = arith.addf %128, %133 : vector<32x32xf32>
    %cst_55 = arith.constant 0.000000e+00 : f32
    %135 = vector.broadcast %cst_55 : f32 to vector<32x32xf32>
    %136 = arith.cmpf oge, %134, %135 : vector<32x32xf32>
    %137 = vector.broadcast %16 : vector<1x32xf32> to vector<32x32xf32>
    %138 = arith.mulf %134, %137 : vector<32x32xf32>
    %139 = arith.select %136, %134, %138 : vector<32x32xi1>, vector<32x32xf32>
    %c1_i32_56 = arith.constant 1 : i32
    %140 = tpu.dynamic_rotate %139 by %c1_i32_56 dim 0 : vector<32x32xf32>, i32 -> vector<32x32xf32>
    %141 = vector.broadcast %0 : vector<32x1xf32> to vector<32x32xf32>
    %142 = arith.mulf %140, %141 : vector<32x32xf32>
    %143 = vector.broadcast %5 : vector<32x1xf32> to vector<32x32xf32>
    %144 = arith.mulf %139, %143 : vector<32x32xf32>
    %145 = arith.addf %142, %144 : vector<32x32xf32>
    %c31_i32_57 = arith.constant 31 : i32
    %146 = tpu.dynamic_rotate %139 by %c31_i32_57 dim 0 : vector<32x32xf32>, i32 -> vector<32x32xf32>
    %147 = vector.broadcast %1 : vector<32x1xf32> to vector<32x32xf32>
    %148 = arith.mulf %146, %147 : vector<32x32xf32>
    %149 = vector.broadcast %7 : vector<32x1xf32> to vector<32x32xf32>
    %150 = arith.mulf %139, %149 : vector<32x32xf32>
    %151 = arith.addf %148, %150 : vector<32x32xf32>
    %152 = arith.maximumf %145, %151 : vector<32x32xf32>
    %153 = arith.maximumf %139, %152 : vector<32x32xf32>
    %c432 = arith.constant 432 : index
    %c0_58 = arith.constant 0 : index
    %154 = vector.load %arg2[%c432, %c0_58] : memref<712x32xf32, #tpu.memory_space<vmem>>, vector<32x32xf32>
    %cst_59 = arith.constant dense<0.000000e+00> : vector<32x32xf32>
    %155 = tpu.matmul %139, %154, %cst_59 {dimension_numbers = #tpu.dot_dimension_numbers<[1], [0], [0], [1], [0, 0, 1, 1], [], []>} : vector<32x32xf32>, vector<32x32xf32>, vector<32x32xf32> -> vector<32x32xf32>
    %c464 = arith.constant 464 : index
    %c0_60 = arith.constant 0 : index
    %156 = vector.load %arg2[%c464, %c0_60] : memref<712x32xf32, #tpu.memory_space<vmem>>, vector<32x32xf32>
    %cst_61 = arith.constant dense<0.000000e+00> : vector<32x32xf32>
    %157 = tpu.matmul %153, %156, %cst_61 {dimension_numbers = #tpu.dot_dimension_numbers<[1], [0], [0], [1], [0, 0, 1, 1], [], []>} : vector<32x32xf32>, vector<32x32xf32>, vector<32x32xf32> -> vector<32x32xf32>
    %158 = arith.addf %155, %157 : vector<32x32xf32>
    %c496 = arith.constant 496 : index
    %c0_62 = arith.constant 0 : index
    %159 = vector.load %arg2[%c496, %c0_62] : memref<712x32xf32, #tpu.memory_space<vmem>>, vector<1x32xf32>
    %160 = vector.broadcast %159 : vector<1x32xf32> to vector<32x32xf32>
    %161 = arith.addf %158, %160 : vector<32x32xf32>
    %cst_63 = arith.constant 0.000000e+00 : f32
    %162 = vector.broadcast %cst_63 : f32 to vector<32x32xf32>
    %163 = arith.cmpf oge, %161, %162 : vector<32x32xf32>
    %cst_64 = arith.constant 2.000000e-02 : f32
    %164 = vector.broadcast %cst_64 : f32 to vector<32x32xf32>
    %165 = arith.mulf %164, %161 : vector<32x32xf32>
    %166 = arith.select %163, %161, %165 : vector<32x32xi1>, vector<32x32xf32>
    %c664 = arith.constant 664 : index
    %c0_65 = arith.constant 0 : index
    %167 = vector.load %arg2[%c664, %c0_65] : memref<712x32xf32, #tpu.memory_space<vmem>>, vector<1x32xf32>
    %c504 = arith.constant 504 : index
    %c0_66 = arith.constant 0 : index
    %168 = vector.load %arg2[%c504, %c0_66] : memref<712x32xf32, #tpu.memory_space<vmem>>, vector<32x32xf32>
    %cst_67 = arith.constant dense<0.000000e+00> : vector<32x32xf32>
    %169 = tpu.matmul %166, %168, %cst_67 {dimension_numbers = #tpu.dot_dimension_numbers<[1], [0], [0], [1], [0, 0, 1, 1], [], []>} : vector<32x32xf32>, vector<32x32xf32>, vector<32x32xf32> -> vector<32x32xf32>
    %170 = vector.broadcast %167 : vector<1x32xf32> to vector<32x32xf32>
    %171 = arith.addf %170, %169 : vector<32x32xf32>
    %c1_i32_68 = arith.constant 1 : i32
    %172 = tpu.dynamic_rotate %166 by %c1_i32_68 dim 0 : vector<32x32xf32>, i32 -> vector<32x32xf32>
    %173 = vector.broadcast %0 : vector<32x1xf32> to vector<32x32xf32>
    %174 = arith.mulf %172, %173 : vector<32x32xf32>
    %c536 = arith.constant 536 : index
    %c0_69 = arith.constant 0 : index
    %175 = vector.load %arg2[%c536, %c0_69] : memref<712x32xf32, #tpu.memory_space<vmem>>, vector<32x32xf32>
    %cst_70 = arith.constant dense<0.000000e+00> : vector<32x32xf32>
    %176 = tpu.matmul %174, %175, %cst_70 {dimension_numbers = #tpu.dot_dimension_numbers<[1], [0], [0], [1], [0, 0, 1, 1], [], []>} : vector<32x32xf32>, vector<32x32xf32>, vector<32x32xf32> -> vector<32x32xf32>
    %177 = arith.addf %171, %176 : vector<32x32xf32>
    %c31_i32_71 = arith.constant 31 : i32
    %178 = tpu.dynamic_rotate %166 by %c31_i32_71 dim 0 : vector<32x32xf32>, i32 -> vector<32x32xf32>
    %179 = vector.broadcast %1 : vector<32x1xf32> to vector<32x32xf32>
    %180 = arith.mulf %178, %179 : vector<32x32xf32>
    %c568 = arith.constant 568 : index
    %c0_72 = arith.constant 0 : index
    %181 = vector.load %arg2[%c568, %c0_72] : memref<712x32xf32, #tpu.memory_space<vmem>>, vector<32x32xf32>
    %cst_73 = arith.constant dense<0.000000e+00> : vector<32x32xf32>
    %182 = tpu.matmul %180, %181, %cst_73 {dimension_numbers = #tpu.dot_dimension_numbers<[1], [0], [0], [1], [0, 0, 1, 1], [], []>} : vector<32x32xf32>, vector<32x32xf32>, vector<32x32xf32> -> vector<32x32xf32>
    %183 = arith.addf %177, %182 : vector<32x32xf32>
    %c2_i32_74 = arith.constant 2 : i32
    %184 = tpu.dynamic_rotate %166 by %c2_i32_74 dim 0 : vector<32x32xf32>, i32 -> vector<32x32xf32>
    %185 = vector.broadcast %2 : vector<32x1xf32> to vector<32x32xf32>
    %186 = arith.mulf %184, %185 : vector<32x32xf32>
    %c600 = arith.constant 600 : index
    %c0_75 = arith.constant 0 : index
    %187 = vector.load %arg2[%c600, %c0_75] : memref<712x32xf32, #tpu.memory_space<vmem>>, vector<32x32xf32>
    %cst_76 = arith.constant dense<0.000000e+00> : vector<32x32xf32>
    %188 = tpu.matmul %186, %187, %cst_76 {dimension_numbers = #tpu.dot_dimension_numbers<[1], [0], [0], [1], [0, 0, 1, 1], [], []>} : vector<32x32xf32>, vector<32x32xf32>, vector<32x32xf32> -> vector<32x32xf32>
    %189 = arith.addf %183, %188 : vector<32x32xf32>
    %c30_i32_77 = arith.constant 30 : i32
    %190 = tpu.dynamic_rotate %166 by %c30_i32_77 dim 0 : vector<32x32xf32>, i32 -> vector<32x32xf32>
    %191 = vector.broadcast %3 : vector<32x1xf32> to vector<32x32xf32>
    %192 = arith.mulf %190, %191 : vector<32x32xf32>
    %c632 = arith.constant 632 : index
    %c0_78 = arith.constant 0 : index
    %193 = vector.load %arg2[%c632, %c0_78] : memref<712x32xf32, #tpu.memory_space<vmem>>, vector<32x32xf32>
    %cst_79 = arith.constant dense<0.000000e+00> : vector<32x32xf32>
    %194 = tpu.matmul %192, %193, %cst_79 {dimension_numbers = #tpu.dot_dimension_numbers<[1], [0], [0], [1], [0, 0, 1, 1], [], []>} : vector<32x32xf32>, vector<32x32xf32>, vector<32x32xf32> -> vector<32x32xf32>
    %195 = arith.addf %189, %194 : vector<32x32xf32>
    %cst_80 = arith.constant 0.000000e+00 : f32
    %196 = vector.broadcast %cst_80 : f32 to vector<32x32xf32>
    %197 = arith.cmpf oge, %195, %196 : vector<32x32xf32>
    %198 = vector.broadcast %16 : vector<1x32xf32> to vector<32x32xf32>
    %199 = arith.mulf %195, %198 : vector<32x32xf32>
    %200 = arith.select %197, %195, %199 : vector<32x32xi1>, vector<32x32xf32>
    %c0_81 = arith.constant 0 : index
    %c0_82 = arith.constant 0 : index
    %201 = vector.load %arg4[%c0_81, %c0_82] : memref<2x32xf32, #tpu.memory_space<vmem>>, vector<2x32xf32>
    %cst_83 = arith.constant dense<0.000000e+00> : vector<2x32xf32>
    %202 = tpu.matmul %201, %200, %cst_83 {dimension_numbers = #tpu.dot_dimension_numbers<[1], [0], [0], [1], [0, 0, 1, 1], [], []>} : vector<2x32xf32>, vector<32x32xf32>, vector<2x32xf32> -> vector<2x32xf32>
    %c672 = arith.constant 672 : index
    %c0_84 = arith.constant 0 : index
    %203 = vector.load %arg2[%c672, %c0_84] : memref<712x32xf32, #tpu.memory_space<vmem>>, vector<32x32xf32>
    %cst_85 = arith.constant dense<0.000000e+00> : vector<2x32xf32>
    %204 = tpu.matmul %202, %203, %cst_85 {dimension_numbers = #tpu.dot_dimension_numbers<[1], [0], [0], [1], [0, 0, 1, 1], [], []>} : vector<2x32xf32>, vector<32x32xf32>, vector<2x32xf32> -> vector<2x32xf32>
    %c704 = arith.constant 704 : index
    %c0_86 = arith.constant 0 : index
    %205 = vector.load %arg2[%c704, %c0_86] : memref<712x32xf32, #tpu.memory_space<vmem>>, vector<1x32xf32>
    %206 = vector.broadcast %205 : vector<1x32xf32> to vector<2x32xf32>
    %207 = arith.addf %204, %206 : vector<2x32xf32>
    %c0_87 = arith.constant 0 : index
    %c0_88 = arith.constant 0 : index
    %208 = vector.load %arg5[%c0_87, %c0_88] : memref<2x32xf32, #tpu.memory_space<vmem>>, vector<2x32xf32>
    tpu.vector_store %arg5[%c0_87, %c0_88], %207 {strides = array<i32>} : memref<2x32xf32, #tpu.memory_space<vmem>>, vector<2x32xf32>,
    return
  }
  func.func @transform_0(%arg0: i32) -> (i32, i32) {
    %c0_i32 = arith.constant 0 : i32
    %c0_i32_0 = arith.constant 0 : i32
    return %arg0, %c0_i32 : i32, i32
  }
  func.func @transform_1(%arg0: i32) -> (i32, i32) {
    %c0_i32 = arith.constant 0 : i32
    %c0_i32_0 = arith.constant 0 : i32
    %c0_i32_1 = arith.constant 0 : i32
    return %c0_i32, %c0_i32_0 : i32, i32
  }
  func.func @transform_2(%arg0: i32) -> (i32, i32) {
    %c0_i32 = arith.constant 0 : i32
    %c0_i32_0 = arith.constant 0 : i32
    %c0_i32_1 = arith.constant 0 : i32
    return %c0_i32, %c0_i32_0 : i32, i32
  }
  func.func @transform_3(%arg0: i32) -> (i32, i32) {
    %c0_i32 = arith.constant 0 : i32
    %c0_i32_0 = arith.constant 0 : i32
    %c0_i32_1 = arith.constant 0 : i32
    return %c0_i32, %c0_i32_0 : i32, i32
  }
  func.func @transform_4(%arg0: i32) -> (i32, i32) {
    %c0_i32 = arith.constant 0 : i32
    %c0_i32_0 = arith.constant 0 : i32
    return %arg0, %c0_i32 : i32, i32
  }
}

</mosaic_0001>

<bundles_post_ra>
// kernel: feature_inception.1
= control target key start
LH: loop header
LB: loop body
LE: loop exit
PB: predicated region body
PF: predicated region fallthrough
CT: control target
= control target key end

     0   :  { %v3748_v1 = vmov 1   ;;  %v3749_v2 = vmov 0   ;;  %s4601_s0 = inlined_call_operand.vmem [shape: f32[32,8], index: 0, kind: input, shape index: {}]   ;;  %s4602_s1 = inlined_call_operand.vmem [shape: f32[712,32], index: 1, kind: input, shape index: {}]   ;;  %s4603_s2 = inlined_call_operand.vmem [shape: f32[32,4], index: 2, kind: input, shape index: {}]   ;;  %s4604_s3 = inlined_call_operand.vmem [shape: f32[2,32], index: 3, kind: input, shape index: {}]   ;;  %s4605_s4 = inlined_call_operand.hbm [shape: f32[2,32], index: 4, kind: output, shape index: {}]  }
   0x1   :  { %v18_v0 = vld [vmem:[%s4603_s2] sm:$0xff]  ;;  %3712 = vset.pattern.permute.xlu1 %v3748_v1  ;;  %3711 = vset.pattern.permute.xlu0 %v3749_v2 }
   0x2   :  { %109 = vperm.xlu1 %3712, %v18_v0   ;;  %49 = vperm.xlu0 %3711, %v18_v0   ;;  %v22_v3 = vsub.f32 1.0, %v18_v0 }
   0x3   :  { %9 = vsyncpa [#allocation3], 0  ;;  %v19_v4 = vld [vmem:[%s4603_s2 + $0x8] sm:$0xff]  ;;  %v20_v6 = vld [vmem:[%s4603_s2 + $0x10] sm:$0xff]  ;;  %v3750_v12 = vmov 2   ;;  %v3751_v13 = vmov 3   ;;  %v26_v14 = vlaneseq }
   0x4   :  { %v23_v5 = vsub.f32 1.0, %v19_v4  ;;  %v24_v7 = vsub.f32 1.0, %v20_v6  ;;  %v21_v8 = vld [vmem:[%s4603_s2 + $0x18] sm:$0xff]  ;;  %v161_v9 = vld [vmem:[%s4602_s1 + $0x8] sm:$0xff]  ;;  %v3800_v11 = vld [vmem:[%s4602_s1] sm:$0xff]  ;;  %vm162_vm2 = vcmask 64512  }
   0x5   :  { %3162 = vmatprep.subr.mxu0 %v161_v9  ;;  %v25_v10 = vsub.f32 1.0, %v21_v8  ;;  %v3806_v15 = vld [vmem:[%s4601_s0 + $0x18] sm:$0xff]  ;;  %v3811_v16 = vld [vmem:[%s4601_s0] sm:$0xff]  ;;  %v3816_v17 = vld [vmem:[%s4601_s0 + $0x8] sm:$0xff]  ;;  %v3819_v18 = vshrl.u32 %v26_v14, 7  ;;  %vm383_vm5 = vcmask 261120  }
   0x6   :  { %129 = vperm.xlu1 %3712, %v22_v3   ;;  %73 = vperm.xlu0 %3711, %v22_v3   ;;  %v36_v19 = vrot.slane %v3811_v16, 7  ;;  %v39_v20 = vrot.slane %v3806_v15, 7  ;;  %v99_v21 = vrot.slane %v3811_v16, 1  ;;  %v100_v22 = vrot.slane %v3816_v17, 1  ;;  %v34_v41 = vld [vmem:[%s4601_s0 + $0x10] sm:$0xff]  ;;  %s3756_s14 = smov [#allocation2]  }
   0x7   :  { %3163 = vmatpush3.msra.mxu0 %v161_v9  ;;  %vm42_vm0 = vcmp.lt.s32.totalorder %v3819_v18, 1  ;;  %vm103_vm1 = vcmp.lt.s32.totalorder %v3819_v18, 7  ;;  %v37_v40 = vrot.slane %v3816_v17, 7  ;;  %v101_v43 = vrot.slane %v34_v41, 1  ;;  %s2889_s15 = sshll.u32 %s3756_s14, 4  ;;  %s2890_s15 = int_to_ptr.vmem [resolvable:$true] %s2889_s15 }
   0x8   :  { %3170 = vmatprep.subr.mxu0 %v3800_v11  ;;  %v46_v25 = vsel %vm42_vm0, %v39_v20, %v36_v19  ;;  %v106_v26 = vsel %vm103_vm1, %v99_v21, %v100_v22  ;;  %v38_v53 = vrot.slane %v34_v41, 7  ;;  %v102_v54 = vrot.slane %v3806_v15, 1  ;;  %s3724_s16 = scalar_lea.vmem %s2890_s15, 32  ;;  %p3729_p1 = scmp.lt.s32.totalorder %s2890_s15, %s2890_s15 }
   0x9   :  { %v45_v45 = vsel %vm42_vm0, %v36_v19, %v37_v40  ;;  %v105_v47 = vsel %vm103_vm1, %v100_v22, %v101_v43  ;;  %vm727_vm6 = vcmp.lt.s32.totalorder %v3819_v18, 2  ;;  %vm861_vm7 = vcmp.lt.s32.totalorder %v3819_v18, 6  ;;  %p3725_p0 = scmp.ne.s32.totalorder %s2890_s15, %s3724_s16  ;;  %p3730_p2 = scmp.lt.s32.totalorder %s3724_s16, %s3724_s16 }
   0xa   :  { %3713 = vset.pattern.permute.xlu1 %v3749_v2  ;;  %54 = vperm.xlu0 %3711, %v19_v4   ;;  %v44_v57 = vsel %vm42_vm0, %v37_v40, %v38_v53  ;;  %v104_v59 = vsel %vm103_vm1, %v101_v43, %v102_v54  ;;  %v619_v43 = vld [vmem:[%s4602_s1 + $0x60] sm:$0xff] }
   0xb   :  { %78 = vperm.xlu1 %3713, %v23_v5   ;;  %p3731_p3 = por %p3730_p2, %p3729_p1 }
   0xd   :  { %p3732_p4 = pnand %p3731_p3, %p3725_p0 }
   0xe   :  { %83 = vperm.xlu0 %3711, %v24_v7  }
   0xf   :  { %3714 = vset.pattern.permute.xlu1 %v3748_v1 }
  0x10   :  { %133 = vperm.xlu1 %3714, %v23_v5  }
  0x12   :  { %64 = vperm.xlu0 %3711, %v21_v8  }
  0x14   :  { %3715 = vset.pattern.permute.xlu1 %v3749_v2 }
  0x15   :  { %59 = vperm.xlu1 %3715, %v20_v6  }
  0x16   :  { %3717 = vset.pattern.permute.xlu0 %v3748_v1 }
  0x17   :  { %113 = vperm.xlu0 %3717, %v19_v4  }
  0x19   :  { %3716 = vset.pattern.permute.xlu1 %v3748_v1 }
  0x1a   :  { %117 = vperm.xlu1 %3716, %v20_v6  }
  0x1b   :  { %121 = vperm.xlu0 %3717, %v21_v8  }
  0x1e   :  { %137 = vperm.xlu1 %3716, %v24_v7  }
  0x1f   :  { %3721 = vset.pattern.permute.xlu0 %v3750_v12 }
  0x20   :  { %737 = vperm.xlu0 %3721, %v19_v4  }
  0x22   :  { %3718 = vset.pattern.permute.xlu1 %v3749_v2 }
  0x23   :  { %88 = vperm.xlu1 %3718, %v25_v10  }
  0x24   :  { %3722 = vset.pattern.permute.xlu0 %v3751_v13 }
  0x25   :  { %867 = vperm.xlu0 %3722, %v18_v0  }
  0x27   :  { %3719 = vset.pattern.permute.xlu1 %v3748_v1 }
  0x28   :  { %141 = vperm.xlu1 %3719, %v25_v10   ;;  %v107_v10 = vsel %vm103_vm1, %v102_v54, %v99_v21  ;;  %v379_v21 = vld [vmem:[%s4602_s1 + $0x18] sm:$0xff] }
  0x29   :  { %879 = vperm.xlu0 %3722, %v21_v8  }
  0x2c   :  { %3720 = vset.pattern.permute.xlu1 %v3750_v12 }
  0x2d   :  { %733 = vperm.xlu1 %3720, %v18_v0  }
  0x31   :  { %741 = vperm.xlu1 %3720, %v20_v6  }
  0x35   :  { %745 = vperm.xlu1 %3720, %v21_v8   ;;  %v43_v8 = vsel %vm42_vm0, %v38_v53, %v39_v20 }
  0x39   :  { %3723 = vset.pattern.permute.xlu1 %v3751_v13 }
  0x3a   :  { %871 = vperm.xlu1 %3723, %v19_v4  }
  0x3e   :  { %875 = vperm.xlu1 %3723, %v20_v6  }
  0x81   :  { %v3827_v23 = vpop.permute.xlu1 %109  ;;  %v3829_v24 = vpop.permute.xlu0 %49 }
  0x82   :  { %v67_v27 = vmul.f32 %v3829_v24, %v46_v25  ;;  %v124_v32 = vmul.f32 %v3827_v23, %v106_v26 }
  0x85   :  { %v3836_v28 = vpop.permute.xlu1 %129  ;;  %v3838_v29 = vpop.permute.xlu0 %73 }
  0x86   :  { %v144_v30 = vmul.f32 %v3836_v28, %v3811_v16  ;;  %v91_v31 = vmul.f32 %v3838_v29, %v3811_v16 }
  0x88   :  { %v95_v33 = vadd.f32 %v91_v31, %v67_v27  ;;  %v148_v34 = vadd.f32 %v144_v30, %v124_v32  ;;  %v380_v30 = vld [vmem:[%s4602_s1 + $0x20] sm:$0xff]  ;;  %v501_v32 = vld [vmem:[%s4602_s1 + $0x38] sm:$0xff] }
  0x89   :  { %v3845_v35 = vpop.permute.xlu0 %54  ;;  %v3466_v31 = vpack.c.bf16 %v380_v30, %v379_v21  ;;  %v620_v30 = vld [vmem:[%s4602_s1 + $0x68] sm:$0xff] }
  0x8a   :  { %v3847_v36 = vpop.permute.xlu1 %78  ;;  %v152_v37 = vmax.f32 %v95_v33, %v148_v34  ;;  %v68_v48 = vmul.f32 %v3845_v35, %v45_v45  ;;  %v502_v33 = vld [vmem:[%s4602_s1 + $0x40] sm:$0xff] }
  0x8b   :  { %v92_v49 = vmul.f32 %v3847_v36, %v3816_v17  ;;  %v3474_v34 = vpack.c.bf16 %v502_v33, %v501_v32 }
  0x8c   :  { %v156_v38 = vmax.f32 %v3811_v16, %v152_v37  ;;  %v503_v37 = vld [vmem:[%s4602_s1 + $0x48] sm:$0xff] }
  0x8d   :  { %v3850_v39 = vpop.permute.xlu0 %83  ;;  %v96_v55 = vadd.f32 %v92_v49, %v68_v48  ;;  %3475 = vmatprep.subr.bf16.mxu1 %v3474_v34 }
  0x8e   :  { %3164 = vmatprep.mubr.msk.f32.mxu0 %vm162_vm2, %v156_v38  ;;  %v93_v0 = vmul.f32 %v3850_v39, %v34_v41  ;;  %3477 = vmatpush3.bf16.msra.mxu1 %v3474_v34  ;;  %v504_v38 = vld [vmem:[%s4602_s1 + $0x50] sm:$0xff] }
  0x8f   :  { %v3857_v42 = vpop.permute.xlu1 %133  ;;  %v3478_v40 = vpack.c.bf16 %v504_v38, %v503_v37 }
  0x90   :  { %v145_v51 = vmul.f32 %v3857_v42, %v3816_v17 }
  0x91   :  { %v3859_v44 = vpop.permute.xlu0 %64  ;;  %3479 = vmatprep.subr.bf16.mxu1 %v3478_v40 }
  0x92   :  { %3481 = vmatpush3.bf16.msra.mxu1 %v3478_v40 }
  0x94   :  { %v3863_v46 = vpop.permute.xlu1 %59 }
  0x95   :  { %v69_v61 = vmul.f32 %v3863_v46, %v44_v57 }
  0x96   :  { %v3870_v50 = vpop.permute.xlu0 %113 }
  0x97   :  { %v125_v52 = vmul.f32 %v3870_v50, %v105_v47  ;;  %v97_v3 = vadd.f32 %v93_v0, %v69_v61  ;;  %v2905_v47 = vld [vmem:[%s4602_s1 + $0x10] ss:$0 sm:$0xff] }
  0x99   :  { %v3876_v56 = vpop.permute.xlu1 %117  ;;  %v149_v58 = vadd.f32 %v145_v51, %v125_v52 }
  0x9a   :  { %v126_v1 = vmul.f32 %v3876_v56, %v104_v59  ;;  %v3895_v9 = vpop.permute.xlu0 %121 }
  0x9b   :  { %v153_v60 = vmax.f32 %v96_v55, %v149_v58  ;;  %v127_v19 = vmul.f32 %v3895_v9, %v107_v10 }
  0x9d   :  { %v3883_v62 = vpop.permute.xlu1 %137  ;;  %v157_v63 = vmax.f32 %v3816_v17, %v153_v60 }
  0x9e   :  { %v146_v2 = vmul.f32 %v3883_v62, %v34_v41 }
  0x9f   :  { %3165 = vmatmul.mubr.msk.f32.vlgmr.msra.gmra.mrb[0].mxu0 %vm162_vm2, %v157_v63 }
  0xa0   :  { %v150_v4 = vadd.f32 %v146_v2, %v126_v1  ;;  %3171 = vmatpush3.msra.mxu0 %v3800_v11  ;;  %v70_v11 = vmul.f32 %v3859_v44, %v43_v8 }
  0xa1   :  { %3467 = vmatprep.subr.bf16.mxu0 %v3466_v31 }
  0xa2   :  { %v154_v5 = vmax.f32 %v97_v3, %v150_v4  ;;  %v3891_v6 = vpop.permute.xlu1 %88 }
  0xa3   :  { %v94_v12 = vmul.f32 %v3891_v6, %v3806_v15 }
  0xa4   :  { %v158_v7 = vmax.f32 %v34_v41, %v154_v5 }
  0xa5   :  { %v98_v20 = vadd.f32 %v94_v12, %v70_v11 }
  0xa6   :  { %3167 = vmatprep.mubr.msk.f32.mxu0 %vm162_vm2, %v158_v7 }
  0xa7   :  { %v3902_v13 = vpop.permute.xlu1 %141 }
  0xa8   :  { %v147_v22 = vmul.f32 %v3902_v13, %v3806_v15 }
  0xaa   :  { %v151_v25 = vadd.f32 %v147_v22, %v127_v19 }
  0xac   :  { %v155_v26 = vmax.f32 %v98_v20, %v151_v25  ;;  %v3983_v33 = vpop.permute.xlu1 %733 }
  0xae   :  { %v159_v27 = vmax.f32 %v3806_v15, %v155_v26 }
  0xb0   :  { %3168 = vmatmul.mubr.msk.f32.gmra.mrb[2].mxu0 %vm162_vm2, %v159_v27 }
  0xb1   :  { %3172 = vmatprep.mubr.msk.f32.mxu0 %vm162_vm2, %v3811_v16  ;;  %v381_v16 = vld [vmem:[%s4602_s1 + $0x28] sm:$0xff] }
  0xb4   :  { %3173 = vmatmul.mubr.msk.f32.vlgmr.msra.gmra.mrb[0].mxu0 %vm162_vm2, %v3816_v17  ;;  %v382_v17 = vld [vmem:[%s4602_s1 + $0x30] sm:$0xff] }
  0xb5   :  { %3175 = vmatprep.mubr.msk.f32.mxu0 %vm162_vm2, %v34_v41  ;;  %3469 = vmatpush3.bf16.msra.mxu0 %v3466_v31  ;;  %v618_v41 = vld [vmem:[%s4602_s1 + $0x58] sm:$0xff]  ;;  %v621_v31 = vld [vmem:[%s4602_s1 + $0x70] sm:$0xff] }
  0xb6   :  { %v3947_v45 = vpack.c.bf16 %v619_v43, %v618_v41 }
  0xb8   :  { %3176 = vmatmul.mubr.msk.f32.gmra.mrb[2].mxu0 %vm162_vm2, %v3806_v15  ;;  %v3470_v15 = vpack.c.bf16 %v382_v17, %v381_v16  ;;  %3483 = vmatprep.subr.bf16.mxu1 %v3947_v45 }
  0xba   :  { %3471 = vmatprep.subr.bf16.mxu0 %v3470_v15 }
  0xbb   :  { %3473 = vmatpush3.bf16.msra.mxu0 %v3470_v15 }
 0x187   :  { %v3174_v48 = vpop.f32.mrb[0].mxu0 }
 0x188   :  { %v363_v49 = vadd.f32 %v3174_v48, %v2905_v47  ;;  %v338_v51 = vpop.f32.mrb[1].mxu0 }
 0x189   :  { %v362_v52 = vadd.f32 %v2905_v47, %v338_v51 }
 0x18a   :  { %vm367_vm3 = vcmp.ge.f32.partialorder %v363_v49, 0.0  ;;  %v371_v53 = vmul.f32 0.02, %v363_v49 }
 0x18b   :  { %vm366_vm4 = vcmp.ge.f32.partialorder %v362_v52, 0.0  ;;  %v370_v54 = vmul.f32 0.02, %v362_v52  ;;  %v3177_v55 = vpop.f32.mrb[2].mxu0 }
 0x18c   :  { %v375_v57 = vsel %vm367_vm3, %v363_v49, %v371_v53  ;;  %v365_v58 = vadd.f32 %v3177_v55, %v2905_v47  ;;  %v348_v59 = vpop.f32.mrb[3].mxu0  ;;  %v752_v55 = vld [vmem:[%s4602_s1 + $0x78] sm:$0xff] }
 0x18d   :  { %v490_v60 = vrot.slane %v375_v57, 7  ;;  %v607_v61 = vrot.slane %v375_v57, 1  ;;  %v374_v63 = vsel %vm366_vm4, %v362_v52, %v370_v54  ;;  %v724_v0 = vrot.slane %v375_v57, 6 }
 0x18e   :  { %v606_v1 = vrot.slane %v374_v63, 1  ;;  %vm369_vm8 = vcmp.ge.f32.partialorder %v365_v58, 0.0  ;;  %v373_v2 = vmul.f32 0.02, %v365_v58  ;;  %v723_v3 = vrot.slane %v374_v63, 6  ;;  %3186 = vmatprep.mubr.msk.f32.mxu0 %vm383_vm5, %v374_v63 }
 0x18f   :  { %v364_v4 = vadd.f32 %v2905_v47, %v348_v59  ;;  %3187 = vmatmul.mubr.msk.f32.vlgmr.msra.gmra.mrb[4].mxu0 %vm383_vm5, %v375_v57  ;;  %v857_v5 = vrot.slane %v374_v63, 2  ;;  %v858_v7 = vrot.slane %v375_v57, 2  ;;  %v489_v8 = vrot.slane %v374_v63, 7  ;;  %v753_v57 = vld [vmem:[%s4602_s1 + $0x80] sm:$0xff] }
 0x190   :  { %v377_v10 = vsel %vm369_vm8, %v365_v58, %v373_v2  ;;  %v3959_v12 = vsel %vm727_vm6, %v723_v3, %v724_v0  ;;  %v612_v11 = vsel %vm103_vm1, %v606_v1, %v607_v61  ;;  %v3486_v47 = vpack.c.bf16 %v621_v31, %v620_v30 }
 0x191   :  { %v609_v19 = vrot.slane %v377_v10, 1  ;;  %v726_v22 = vrot.slane %v377_v10, 6  ;;  %vm368_vm9 = vcmp.ge.f32.partialorder %v364_v4, 0.0  ;;  %v372_v20 = vmul.f32 0.02, %v364_v4 }
 0x192   :  { %v3965_v25 = vsel %vm861_vm7, %v857_v5, %v858_v7  ;;  %v860_v26 = vrot.slane %v377_v10, 2  ;;  %v492_v27 = vrot.slane %v377_v10, 7  ;;  %v495_v21 = vsel %vm42_vm0, %v489_v8, %v490_v60 }
 0x193   :  { %v613_v16 = vsel %vm103_vm1, %v609_v19, %v606_v1  ;;  %v376_v17 = vsel %vm368_vm9, %v364_v4, %v372_v20  ;;  %v498_v43 = vmul.f32 %v495_v21, %v3845_v35  ;;  %v731_v48 = vsel %vm727_vm6, %v726_v22, %v723_v3  ;;  %v754_v4 = vld [vmem:[%s4602_s1 + $0x88] sm:$0xff]  ;;  %v889_v21 = vld [vmem:[%s4602_s1 + $0xb0] sm:$0xff] }
 0x194   :  { %v3979_v15 = vsel %vm861_vm7, %v860_v26, %v857_v5  ;;  %v496_v32 = vsel %vm42_vm0, %v492_v27, %v489_v8  ;;  %v491_v34 = vrot.slane %v376_v17, 7  ;;  %v608_v37 = vrot.slane %v376_v17, 1  ;;  %3189 = vmatprep.mubr.msk.f32.mxu0 %vm383_vm5, %v376_v17  ;;  %v886_v8 = vld [vmem:[%s4602_s1 + $0x98] sm:$0xff] }
 0x195   :  { %v725_v38 = vrot.slane %v376_v17, 6  ;;  %v859_v40 = vrot.slane %v376_v17, 2  ;;  %3190 = vmatmul.mubr.msk.f32.gmra.mrb[6].mxu0 %vm383_vm5, %v377_v10  ;;  %v497_v41 = vmul.f32 %v496_v32, %v3829_v24  ;;  %v3490_v1 = vpack.c.bf16 %v753_v57, %v752_v55  ;;  %v887_v10 = vld [vmem:[%s4602_s1 + $0xa0] sm:$0xff] }
 0x196   :  { %v611_v49 = vsel %vm103_vm1, %v607_v61, %v608_v37  ;;  %v494_v53 = vsel %vm42_vm0, %v490_v60, %v491_v34  ;;  %v493_v58 = vsel %vm42_vm0, %v491_v34, %v492_v27  ;;  %v610_v59 = vsel %vm103_vm1, %v608_v37, %v609_v19  ;;  %v4016_v61 = vpop.permute.xlu1 %741  ;;  %v4042_v19 = vpop.permute.xlu0 %737  ;;  %v888_v27 = vld [vmem:[%s4602_s1 + $0xa8] sm:$0xff] }
 0x197   :  { %v863_v51 = vsel %vm861_vm7, %v858_v7, %v859_v40  ;;  %v862_v52 = vsel %vm861_vm7, %v859_v40, %v860_v26  ;;  %3200 = vmatprep.mubr.msk.f32.mxu1 %vm383_vm5, %v497_v41  ;;  %v499_v54 = vmul.f32 %v494_v53, %v3863_v46  ;;  %v729_v60 = vsel %vm727_vm6, %v724_v0, %v725_v38  ;;  %v755_v0 = vld [vmem:[%s4602_s1 + $0x90] sm:$0xff]  ;;  %v1052_v53 = vld [vmem:[%s4602_s1 + $0xc8] sm:$0xff] }
 0x198   :  { %3201 = vmatmul.mubr.msk.f32.vlgmr.msra.gmra.mrb[0].mxu1 %vm383_vm5, %v498_v43  ;;  %v500_v63 = vmul.f32 %v493_v58, %v3859_v44  ;;  %v728_v2 = vsel %vm727_vm6, %v725_v38, %v726_v22  ;;  %v614_v3 = vmul.f32 %v612_v11, %v3827_v23  ;;  %v3494_v5 = vpack.c.bf16 %v755_v0, %v754_v4  ;;  %v1055_v43 = vld [vmem:[%s4602_s1 + $0xe0] sm:$0xff] }
 0x199   :  { %3203 = vmatprep.mubr.msk.f32.mxu1 %vm383_vm5, %v499_v54  ;;  %3485 = vmatpush3.bf16.msra.mxu1 %v3947_v45  ;;  %v615_v45 = vmul.f32 %v611_v49, %v3870_v50  ;;  %v616_v7 = vmul.f32 %v610_v59, %v3876_v56  ;;  %v617_v22 = vmul.f32 %v613_v16, %v3895_v9 }
 0x19a   :  { %3487 = vmatprep.subr.bf16.mxu1 %v3486_v47  ;;  %v4038_v11 = vpop.permute.xlu1 %745  ;;  %v3498_v20 = vpack.c.bf16 %v887_v10, %v886_v8  ;;  %v748_v26 = vmul.f32 %v3983_v33, %v731_v48  ;;  %v749_v30 = vmul.f32 %v4042_v19, %v3959_v12  ;;  %v3502_v16 = vpack.c.bf16 %v889_v21, %v888_v27  ;;  %v4059_v32 = vpop.permute.xlu0 %867  ;;  %v1057_v48 = vld [vmem:[%s4602_s1 + $0xf0] sm:$0xff] }
 0x19b   :  { %v750_v17 = vmul.f32 %v4016_v61, %v729_v60  ;;  %v751_v34 = vmul.f32 %v4038_v11, %v728_v2  ;;  %v882_v37 = vmul.f32 %v4059_v32, %v3965_v25  ;;  %v27_v60 = vand.u32 127, %v26_v14 }
 0x19c   :  { %3204 = vmatmul.mubr.msk.f32.gmra.mrb[2].mxu1 %vm383_vm5, %v500_v63  ;;  %v2910_v63 = vld [vmem:[%s4602_s1 + $0xb8] ss:$0 sm:$0xff] }
 0x19d   :  { %3489 = vmatpush3.bf16.msra.mxu1 %v3486_v47  ;;  %3214 = vmatprep.mubr.msk.f32.mxu1 %vm383_vm5, %v614_v3  ;;  %v1056_v47 = vld [vmem:[%s4602_s1 + $0xe8] sm:$0xff]  ;;  %vm28_vm10 = vcmp.ge.s32.totalorder %v27_v60, 8  ;;  %vm29_vm11 = vcmp.lt.s32.totalorder %v27_v60, 24  ;;  %v3752_v3 = vmov 1.0  }
 0x19e   :  { %3491 = vmatprep.subr.bf16.mxu1 %v3490_v1  ;;  %v4056_v31 = vpop.permute.xlu1 %871  ;;  %v4071_v40 = vpop.permute.xlu0 %879  ;;  %v3506_v49 = vpack.c.bf16 %v1056_v47, %v1055_v43  ;;  %vm30_vm12 = vmand %vm28_vm10, %vm29_vm11 }
 0x19f   :  { %v883_v38 = vmul.f32 %v4056_v31, %v863_v51  ;;  %v885_v25 = vmul.f32 %v4071_v40, %v3979_v15  ;;  %v1058_v51 = vld [vmem:[%s4602_s1 + $0xf8] sm:$0xff]  ;;  %v4104_v4 = vsel %vm30_vm12, 0.02, %v3752_v3 }
 0x1a0   :  { %3215 = vmatmul.mubr.msk.f32.vlgmr.msra.gmra.mrb[0].mxu1 %vm383_vm5, %v615_v45  ;;  %v3510_v15 = vpack.c.bf16 %v1058_v51, %v1057_v48  ;;  %3507 = vmatprep.subr.bf16.mxu0 %v3506_v49 }
 0x1a1   :  { %3217 = vmatprep.mubr.msk.f32.mxu1 %vm383_vm5, %v616_v7  ;;  %3493 = vmatpush3.bf16.msra.mxu1 %v3490_v1 }
 0x1a2   :  { %3495 = vmatprep.subr.bf16.mxu1 %v3494_v5  ;;  %v4066_v12 = vpop.permute.xlu1 %875  ;;  %3509 = vmatpush3.bf16.msra.mxu0 %v3506_v49 }
 0x1a3   :  { %v884_v41 = vmul.f32 %v4066_v12, %v862_v52  ;;  %3511 = vmatprep.subr.bf16.mxu0 %v3510_v15  ;;  %v1051_v52 = vld [vmem:[%s4602_s1 + $0xc0] sm:$0xff] }
 0x1a4   :  { %3218 = vmatmul.mubr.msk.f32.gmra.mrb[2].mxu1 %vm383_vm5, %v617_v22  ;;  %v4097_v54 = vpack.c.bf16 %v1052_v53, %v1051_v52 }
 0x1a5   :  { %3497 = vmatpush3.bf16.msra.mxu1 %v3494_v5  ;;  %3228 = vmatprep.mubr.msk.f32.mxu1 %vm383_vm5, %v748_v26 }
 0x1a6   :  { %3499 = vmatprep.subr.bf16.mxu1 %v3498_v20  ;;  %3513 = vmatpush3.bf16.msra.mxu0 %v3510_v15 }
 0x1a7   :  { %3515 = vmatprep.subr.bf16.mxu0 %v4097_v54 }
 0x1a8   :  { %3229 = vmatmul.mubr.msk.f32.vlgmr.msra.gmra.mrb[0].mxu1 %vm383_vm5, %v749_v30 }
 0x1a9   :  { %3231 = vmatprep.mubr.msk.f32.mxu1 %vm383_vm5, %v750_v17  ;;  %3501 = vmatpush3.bf16.msra.mxu1 %v3498_v20 }
 0x1aa   :  { %3503 = vmatprep.subr.bf16.mxu1 %v3502_v16 }
 0x1ac   :  { %3232 = vmatmul.mubr.msk.f32.gmra.mrb[2].mxu1 %vm383_vm5, %v751_v34 }
 0x1ad   :  { %3505 = vmatpush3.bf16.msra.mxu1 %v3502_v16  ;;  %3242 = vmatprep.mubr.msk.f32.mxu1 %vm383_vm5, %v882_v37 }
 0x1b0   :  { %3243 = vmatmul.mubr.msk.f32.vlgmr.msra.gmra.mrb[0].mxu1 %vm383_vm5, %v883_v38 }
 0x1b1   :  { %3245 = vmatprep.mubr.msk.f32.mxu1 %vm383_vm5, %v884_v41 }
 0x1b4   :  { %3246 = vmatmul.mubr.msk.f32.gmra.mrb[2].mxu1 %vm383_vm5, %v885_v25 }
 0x262   :  { %v3188_v55 = vpop.f32.mrb[4].mxu0 }
 0x263   :  { %v462_v57 = vpop.f32.mrb[5].mxu0  ;;  %v486_v1 = vadd.f32 %v3188_v55, %v2910_v63 }
 0x264   :  { %v485_v2 = vadd.f32 %v2910_v63, %v462_v57 }
 0x268   :  { %v3191_v58 = vpop.f32.mrb[6].mxu0 }
 0x269   :  { %v472_v59 = vpop.f32.mrb[7].mxu0  ;;  %v488_v8 = vadd.f32 %v3191_v58, %v2910_v63 }
 0x26a   :  { %v487_v20 = vadd.f32 %v2910_v63, %v472_v59 }
 0x283   :  { %v3244_v0 = vpop.f32.mrb[0].mxu1 }
 0x284   :  { %v3631_v45 = vadd.f32 %v3244_v0, %v486_v1  ;;  %v968_v5 = vpop.f32.mrb[1].mxu1 }
 0x285   :  { %v3633_v7 = vadd.f32 %v968_v5, %v485_v2 }
 0x286   :  { %vm992_vm13 = vcmp.ge.f32.partialorder %v3631_v45, 0.0  ;;  %v996_v14 = vmul.f32 %v3631_v45, %v4104_v4 }
 0x287   :  { %vm991_vm14 = vcmp.ge.f32.partialorder %v3633_v7, 0.0  ;;  %v995_v10 = vmul.f32 %v3633_v7, %v4104_v4  ;;  %v3247_v22 = vpop.f32.mrb[2].mxu1 }
 0x288   :  { %v4108_v26 = vsel %vm992_vm13, %v3631_v45, %v996_v14  ;;  %v3635_v27 = vadd.f32 %v3247_v22, %v488_v8  ;;  %v978_v21 = vpop.f32.mrb[3].mxu1 }
 0x289   :  { %v1004_v30 = vrot.slane %v4108_v26, 7  ;;  %v1024_v16 = vrot.slane %v4108_v26, 1  ;;  %v4112_v17 = vsel %vm991_vm14, %v3633_v7, %v995_v10  ;;  %v3637_v37 = vadd.f32 %v978_v21, %v487_v20 }
 0x28a   :  { %vm994_vm15 = vcmp.ge.f32.partialorder %v3635_v27, 0.0  ;;  %v998_v34 = vmul.f32 %v3635_v27, %v4104_v4  ;;  %v1016_v38 = vmul.f32 %v4108_v26, %v3847_v36  ;;  %v1036_v41 = vmul.f32 %v4108_v26, %v3857_v42 }
 0x28b   :  { %v1003_v25 = vrot.slane %v4112_v17, 7  ;;  %v1023_v43 = vrot.slane %v4112_v17, 1  ;;  %vm993_vm2 = vcmp.ge.f32.partialorder %v3637_v37, 0.0  ;;  %v997_v48 = vmul.f32 %v3637_v37, %v4104_v4 }
 0x28c   :  { %v1002_v47 = vsel %vm994_vm15, %v3635_v27, %v998_v34  ;;  %v1015_v49 = vmul.f32 %v4112_v17, %v3838_v29  ;;  %v1035_v59 = vmul.f32 %v4112_v17, %v3836_v28 }
 0x28d   :  { %v1009_v51 = vsel %vm42_vm0, %v1003_v25, %v1004_v30  ;;  %v1006_v15 = vrot.slane %v1002_v47, 7  ;;  %v1026_v52 = vrot.slane %v1002_v47, 1  ;;  %v1029_v53 = vsel %vm103_vm1, %v1023_v43, %v1024_v16 }
 0x28e   :  { %v1012_v55 = vmul.f32 %v1009_v51, %v3845_v35  ;;  %v1001_v57 = vsel %vm993_vm2, %v3637_v37, %v997_v48  ;;  %v1031_v58 = vmul.f32 %v1029_v53, %v3827_v23  ;;  %v1053_v53 = vld [vmem:[%s4602_s1 + $0xd0] sm:$0xff] }
 0x28f   :  { %v1005_v60 = vrot.slane %v1001_v57, 7  ;;  %v1025_v63 = vrot.slane %v1001_v57, 1  ;;  %v1010_v1 = vsel %vm42_vm0, %v1006_v15, %v1003_v25  ;;  %v1017_v2 = vmul.f32 %v1001_v57, %v3850_v39 }
 0x290   :  { %v1011_v3 = vmul.f32 %v1010_v1, %v3829_v24  ;;  %v1039_v0 = vadd.f32 %v1035_v59, %v1031_v58  ;;  %v1020_v45 = vadd.f32 %v1016_v38, %v1012_v55  ;;  %v1037_v5 = vmul.f32 %v1001_v57, %v3883_v62  ;;  %v1054_v55 = vld [vmem:[%s4602_s1 + $0xd8] sm:$0xff] }
 0x291   :  { %v1028_v7 = vsel %vm103_vm1, %v1024_v16, %v1025_v63  ;;  %v1008_v8 = vsel %vm42_vm0, %v1004_v30, %v1005_v60  ;;  %v1027_v14 = vsel %vm103_vm1, %v1025_v63, %v1026_v52  ;;  %v1007_v10 = vsel %vm42_vm0, %v1005_v60, %v1006_v15 }
 0x292   :  { %v1032_v22 = vmul.f32 %v1028_v7, %v3870_v50  ;;  %v1019_v20 = vadd.f32 %v1015_v49, %v1011_v3  ;;  %v1013_v27 = vmul.f32 %v1008_v8, %v3863_v46  ;;  %v1033_v21 = vmul.f32 %v1027_v14, %v3876_v56  ;;  %v1275_v3 = vld [vmem:[%s4602_s1 + $0x108] sm:$0xff]  ;;  %v2935_v7 = vld [vmem:[%s4602_s1 + $0x100] ss:$0 sm:$0xff] }
 0x293   :  { %v1014_v34 = vmul.f32 %v1007_v10, %v3859_v44  ;;  %v1018_v16 = vmul.f32 %v1002_v47, %v3891_v6  ;;  %v1030_v30 = vsel %vm103_vm1, %v1026_v52, %v1023_v43  ;;  %v1038_v49 = vmul.f32 %v1002_v47, %v3902_v13 }
 0x294   :  { %v1043_v37 = vmax.f32 %v1019_v20, %v1039_v0  ;;  %v1040_v38 = vadd.f32 %v1036_v41, %v1032_v22  ;;  %v1021_v25 = vadd.f32 %v1017_v2, %v1013_v27  ;;  %v1041_v48 = vadd.f32 %v1037_v5, %v1033_v21  ;;  %v1398_v27 = vld [vmem:[%s4602_s1 + $0x138] sm:$0xff]  ;;  %v1399_v21 = vld [vmem:[%s4602_s1 + $0x140] sm:$0xff] }
 0x295   :  { %v1022_v51 = vadd.f32 %v1018_v16, %v1014_v34  ;;  %v1034_v15 = vmul.f32 %v1030_v30, %v3895_v9  ;;  %v3518_v63 = vpack.c.bf16 %v1054_v55, %v1053_v53 }
 0x296   :  { %v1047_v58 = vmax.f32 %v4112_v17, %v1043_v37  ;;  %v1044_v43 = vmax.f32 %v1020_v45, %v1040_v38  ;;  %v1045_v52 = vmax.f32 %v1021_v25, %v1041_v48  ;;  %v1397_v45 = vld [vmem:[%s4602_s1 + $0x130] sm:$0xff] }
 0x297   :  { %v1042_v41 = vadd.f32 %v1038_v49, %v1034_v15 }
 0x298   :  { %3256 = vmatprep.mubr.msk.f32.mxu0 %vm383_vm5, %v1047_v58  ;;  %v1048_v59 = vmax.f32 %v4108_v26, %v1044_v43  ;;  %v1049_v60 = vmax.f32 %v1001_v57, %v1045_v52 }
 0x299   :  { %v1046_v1 = vmax.f32 %v1022_v51, %v1042_v41  ;;  %v3534_v51 = vpack.c.bf16 %v1399_v21, %v1398_v27  ;;  %v1513_v41 = vld [vmem:[%s4602_s1 + $0x148] sm:$0xff] }
 0x29a   :  { %3257 = vmatmul.mubr.msk.f32.vlgmr.msra.gmra.mrb[8].mxu0 %vm383_vm5, %v1048_v59  ;;  %v1514_v59 = vld [vmem:[%s4602_s1 + $0x150] sm:$0xff] }
 0x29b   :  { %3259 = vmatprep.mubr.msk.f32.mxu0 %vm383_vm5, %v1049_v60  ;;  %3517 = vmatpush3.bf16.msra.mxu0 %v4097_v54  ;;  %v1050_v2 = vmax.f32 %v1002_v47, %v1046_v1  ;;  %v1276_v54 = vld [vmem:[%s4602_s1 + $0x110] sm:$0xff] }
 0x29c   :  { %3519 = vmatprep.subr.bf16.mxu0 %v3518_v63  ;;  %v3522_v0 = vpack.c.bf16 %v1276_v54, %v1275_v3 }
 0x29e   :  { %3260 = vmatmul.mubr.msk.f32.gmra.mrb[10].mxu0 %vm383_vm5, %v1050_v2 }
 0x29f   :  { %3521 = vmatpush3.bf16.msra.mxu0 %v3518_v63  ;;  %3270 = vmatprep.mubr.msk.f32.mxu0 %vm383_vm5, %v4112_v17  ;;  %v1277_v17 = vld [vmem:[%s4602_s1 + $0x118] sm:$0xff] }
 0x2a0   :  { %3523 = vmatprep.subr.bf16.mxu0 %v3522_v0 }
 0x2a2   :  { %3271 = vmatmul.mubr.msk.f32.vlgmr.msra.gmra.mrb[8].mxu0 %vm383_vm5, %v4108_v26  ;;  %v1278_v26 = vld [vmem:[%s4602_s1 + $0x120] sm:$0xff] }
 0x2a3   :  { %3273 = vmatprep.mubr.msk.f32.mxu0 %vm383_vm5, %v1001_v57  ;;  %3525 = vmatpush3.bf16.msra.mxu0 %v3522_v0  ;;  %v1396_v57 = vld [vmem:[%s4602_s1 + $0x128] sm:$0xff] }
 0x2a4   :  { %v3530_v5 = vpack.c.bf16 %v1397_v45, %v1396_v57 }
 0x2a6   :  { %3274 = vmatmul.mubr.msk.f32.gmra.mrb[10].mxu0 %vm383_vm5, %v1002_v47  ;;  %v3526_v47 = vpack.c.bf16 %v1278_v26, %v1277_v17  ;;  %v3538_v26 = vpack.c.bf16 %v1514_v59, %v1513_v41 }
 0x2a8   :  { %3527 = vmatprep.subr.bf16.mxu0 %v3526_v47 }
 0x2a9   :  { %3529 = vmatpush3.bf16.msra.mxu0 %v3526_v47 }
 0x2aa   :  { %3531 = vmatprep.subr.bf16.mxu0 %v3530_v5 }
 0x375   :  { %v3272_v8 = vpop.f32.mrb[8].mxu0 }
 0x376   :  { %v1259_v14 = vadd.f32 %v3272_v8, %v2935_v7  ;;  %v1234_v10 = vpop.f32.mrb[9].mxu0 }
 0x377   :  { %v1258_v22 = vadd.f32 %v2935_v7, %v1234_v10 }
 0x378   :  { %vm1263_vm3 = vcmp.ge.f32.partialorder %v1259_v14, 0.0  ;;  %v1267_v20 = vmul.f32 0.02, %v1259_v14 }
 0x379   :  { %vm1262_vm4 = vcmp.ge.f32.partialorder %v1258_v22, 0.0  ;;  %v1266_v34 = vmul.f32 0.02, %v1258_v22  ;;  %v3275_v16 = vpop.f32.mrb[10].mxu0 }
 0x37a   :  { %v4200_v30 = vsel %vm1263_vm3, %v1259_v14, %v1267_v20  ;;  %v1261_v37 = vadd.f32 %v3275_v16, %v2935_v7  ;;  %v1244_v38 = vpop.f32.mrb[11].mxu0  ;;  %v1516_v20 = vld [vmem:[%s4602_s1 + $0x160] sm:$0xff] }
 0x37b   :  { %v1385_v25 = vrot.slane %v4200_v30, 7  ;;  %v1619_v48 = vrot.slane %v4200_v30, 6  ;;  %v4204_v15 = vsel %vm1262_vm4, %v1258_v22, %v1266_v34  ;;  %v1260_v53 = vadd.f32 %v2935_v7, %v1244_v38 }
 0x37c   :  { %vm1265_vm8 = vcmp.ge.f32.partialorder %v1261_v37, 0.0  ;;  %v1269_v49 = vmul.f32 0.02, %v1261_v37  ;;  %v1502_v55 = vrot.slane %v4200_v30, 1  ;;  %v1384_v58 = vrot.slane %v4204_v15, 7  ;;  %3284 = vmatprep.mubr.msk.f32.mxu0 %vm383_vm5, %v4204_v15 }
 0x37d   :  { %v1501_v43 = vrot.slane %v4204_v15, 1  ;;  %v1618_v52 = vrot.slane %v4204_v15, 6  ;;  %vm1264_vm9 = vcmp.ge.f32.partialorder %v1260_v53, 0.0  ;;  %v1268_v63 = vmul.f32 0.02, %v1260_v53  ;;  %3285 = vmatmul.mubr.msk.f32.vlgmr.msra.gmra.mrb[12].mxu0 %vm383_vm5, %v4200_v30 }
 0x37e   :  { %v1273_v60 = vsel %vm1265_vm8, %v1261_v37, %v1269_v49  ;;  %v1390_v1 = vsel %vm42_vm0, %v1384_v58, %v1385_v25  ;;  %3533 = vmatpush3.bf16.msra.mxu0 %v3530_v5  ;;  %v1736_v0 = vrot.slane %v4200_v30, 2  ;;  %v1515_v5 = vld [vmem:[%s4602_s1 + $0x158] sm:$0xff]  ;;  %v1735_v27 = vrot.slane %v4204_v15, 2 }
 0x37f   :  { %v4224_v2 = vsel %vm727_vm6, %v1618_v52, %v1619_v48  ;;  %v1387_v3 = vrot.slane %v1273_v60, 7  ;;  %v1504_v54 = vrot.slane %v1273_v60, 1  ;;  %v1621_v17 = vrot.slane %v1273_v60, 6  ;;  %3535 = vmatprep.subr.bf16.mxu0 %v3534_v51 }
 0x380   :  { %v1272_v47 = vsel %vm1264_vm9, %v1260_v53, %v1268_v63  ;;  %v1507_v45 = vsel %vm103_vm1, %v1501_v43, %v1502_v55  ;;  %v1738_v21 = vrot.slane %v1273_v60, 2  ;;  %v1393_v49 = vmul.f32 %v1390_v1, %v3845_v35 }
 0x381   :  { %v1391_v57 = vsel %vm42_vm0, %v1387_v3, %v1384_v58  ;;  %v1508_v7 = vsel %vm103_vm1, %v1504_v54, %v1501_v43  ;;  %v1386_v8 = vrot.slane %v1272_v47, 7  ;;  %v1503_v14 = vrot.slane %v1272_v47, 1  ;;  %3287 = vmatprep.mubr.msk.f32.mxu0 %vm383_vm5, %v1272_v47 }
 0x382   :  { %v1620_v10 = vrot.slane %v1272_v47, 6  ;;  %v1737_v22 = vrot.slane %v1272_v47, 2  ;;  %3288 = vmatmul.mubr.msk.f32.gmra.mrb[14].mxu0 %vm383_vm5, %v1273_v60  ;;  %v1392_v34 = vmul.f32 %v1391_v57, %v3829_v24  ;;  %v1625_v16 = vsel %vm727_vm6, %v1621_v17, %v1618_v52  ;;  %v1747_v47 = vld [vmem:[%s4602_s1 + $0x188] sm:$0xff]  ;;  %v1748_v57 = vld [vmem:[%s4602_s1 + $0x190] sm:$0xff] }
 0x383   :  { %v1506_v30 = vsel %vm103_vm1, %v1502_v55, %v1503_v14  ;;  %3537 = vmatpush3.bf16.msra.mxu0 %v3534_v51  ;;  %v1389_v38 = vsel %vm42_vm0, %v1385_v25, %v1386_v8  ;;  %v1388_v15 = vsel %vm42_vm0, %v1386_v8, %v1387_v3  ;;  %v3542_v58 = vpack.c.bf16 %v1516_v20, %v1515_v5  ;;  %v1630_v55 = vld [vmem:[%s4602_s1 + $0x168] sm:$0xff]  ;;  %v1631_v51 = vld [vmem:[%s4602_s1 + $0x170] sm:$0xff]  ;;  %v1632_v3 = vld [vmem:[%s4602_s1 + $0x178] sm:$0xff] }
 0x384   :  { %v1740_v37 = vsel %vm861_vm7, %v1736_v0, %v1737_v22  ;;  %3298 = vmatprep.mubr.msk.f32.mxu0 %vm383_vm5, %v1392_v34  ;;  %3539 = vmatprep.subr.bf16.mxu0 %v3538_v26  ;;  %v1394_v53 = vmul.f32 %v1389_v38, %v3863_v46  ;;  %v1505_v25 = vsel %vm103_vm1, %v1503_v14, %v1504_v54  ;;  %v1633_v54 = vld [vmem:[%s4602_s1 + $0x180] sm:$0xff]  ;;  %v1917_v38 = vld [vmem:[%s4602_s1 + $0x1d8] sm:$0xff]  ;;  %vm2881_vm8 = vcmask 254976  }
 0x385   :  { %v1623_v43 = vsel %vm727_vm6, %v1619_v48, %v1620_v10  ;;  %v1622_v52 = vsel %vm727_vm6, %v1620_v10, %v1621_v17  ;;  %v1741_v41 = vsel %vm861_vm7, %v1735_v27, %v1736_v0  ;;  %v1739_v59 = vsel %vm861_vm7, %v1737_v22, %v1738_v21  ;;  %v1749_v10 = vld [vmem:[%s4602_s1 + $0x198] sm:$0xff]  ;;  %v1750_v22 = vld [vmem:[%s4602_s1 + $0x1a0] sm:$0xff] }
 0x386   :  { %3299 = vmatmul.mubr.msk.f32.vlgmr.msra.gmra.mrb[12].mxu0 %vm383_vm5, %v1393_v49  ;;  %v1395_v60 = vmul.f32 %v1388_v15, %v3859_v44  ;;  %v3546_v63 = vpack.c.bf16 %v1631_v51, %v1630_v55  ;;  %v1742_v48 = vsel %vm861_vm7, %v1738_v21, %v1735_v27  ;;  %v1509_v1 = vmul.f32 %v1507_v45, %v3827_v23  ;;  %v1919_v49 = vld [vmem:[%s4602_s1 + $0x1e8] sm:$0xff]  ;;  %v1913_v55 = vld [vmem:[%s4602_s1 + $0x1b8] sm:$0xff] }
 0x387   :  { %3301 = vmatprep.mubr.msk.f32.mxu0 %vm383_vm5, %v1394_v53  ;;  %3541 = vmatpush3.bf16.msra.mxu0 %v3538_v26  ;;  %v1510_v0 = vmul.f32 %v1506_v30, %v3870_v50  ;;  %v3550_v17 = vpack.c.bf16 %v1633_v54, %v1632_v3  ;;  %v1511_v26 = vmul.f32 %v1505_v25, %v3876_v56  ;;  %v1916_v30 = vld [vmem:[%s4602_s1 + $0x1d0] sm:$0xff]  ;;  %v2940_v25 = vld [vmem:[%s4602_s1 + $0x1a8] ss:$0 sm:$0xff] }
 0x388   :  { %3543 = vmatprep.subr.bf16.mxu0 %v3542_v58  ;;  %v1512_v45 = vmul.f32 %v1508_v7, %v3895_v9  ;;  %v3554_v8 = vpack.c.bf16 %v1748_v57, %v1747_v47  ;;  %v1626_v14 = vmul.f32 %v1625_v16, %v3983_v33  ;;  %v1627_v7 = vmul.f32 %v4224_v2, %v4042_v19 }
 0x389   :  { %v3558_v5 = vpack.c.bf16 %v1750_v22, %v1749_v10  ;;  %v1628_v20 = vmul.f32 %v1623_v43, %v4016_v61  ;;  %v1629_v27 = vmul.f32 %v1622_v52, %v4038_v11  ;;  %v1743_v21 = vmul.f32 %v1741_v41, %v4059_v32 }
 0x38a   :  { %3302 = vmatmul.mubr.msk.f32.gmra.mrb[14].mxu0 %vm383_vm5, %v1395_v60  ;;  %v1744_v2 = vmul.f32 %v1740_v37, %v4056_v31  ;;  %v1745_v34 = vmul.f32 %v1739_v59, %v4066_v12  ;;  %v1746_v16 = vmul.f32 %v1742_v48, %v4071_v40  ;;  %v1918_v37 = vld [vmem:[%s4602_s1 + $0x1e0] sm:$0xff]  ;;  %v3562_v15 = vpack.c.bf16 %v1917_v38, %v1916_v30 }
 0x38b   :  { %3545 = vmatpush3.bf16.msra.mxu0 %v3542_v58  ;;  %3312 = vmatprep.mubr.msk.f32.mxu0 %vm383_vm5, %v1509_v1  ;;  %v3566_v53 = vpack.c.bf16 %v1919_v49, %v1918_v37  ;;  %v1912_v58 = vld [vmem:[%s4602_s1 + $0x1b0] sm:$0xff] }
 0x38c   :  { %3547 = vmatprep.subr.bf16.mxu0 %v3546_v63  ;;  %3563 = vmatprep.subr.bf16.mxu1 %v3562_v15  ;;  %v4339_v51 = vpack.c.bf16 %v1913_v55, %v1912_v58 }
 0x38d   :  { %3565 = vmatpush3.bf16.msra.mxu1 %v3562_v15 }
 0x38e   :  { %3313 = vmatmul.mubr.msk.f32.vlgmr.msra.gmra.mrb[12].mxu0 %vm383_vm5, %v1510_v0  ;;  %3567 = vmatprep.subr.bf16.mxu1 %v3566_v53 }
 0x38f   :  { %3315 = vmatprep.mubr.msk.f32.mxu0 %vm383_vm5, %v1511_v26  ;;  %3549 = vmatpush3.bf16.msra.mxu0 %v3546_v63 }
 0x390   :  { %3551 = vmatprep.subr.bf16.mxu0 %v3550_v17 }
 0x391   :  { %3569 = vmatpush3.bf16.msra.mxu1 %v3566_v53 }
 0x392   :  { %3316 = vmatmul.mubr.msk.f32.gmra.mrb[14].mxu0 %vm383_vm5, %v1512_v45  ;;  %3571 = vmatprep.subr.bf16.mxu1 %v4339_v51 }
 0x393   :  { %3553 = vmatpush3.bf16.msra.mxu0 %v3550_v17  ;;  %3326 = vmatprep.mubr.msk.f32.mxu0 %vm383_vm5, %v1626_v14 }
 0x394   :  { %3555 = vmatprep.subr.bf16.mxu0 %v3554_v8 }
 0x396   :  { %3327 = vmatmul.mubr.msk.f32.vlgmr.msra.gmra.mrb[12].mxu0 %vm383_vm5, %v1627_v7 }
 0x397   :  { %3329 = vmatprep.mubr.msk.f32.mxu0 %vm383_vm5, %v1628_v20  ;;  %3557 = vmatpush3.bf16.msra.mxu0 %v3554_v8 }
 0x398   :  { %3559 = vmatprep.subr.bf16.mxu0 %v3558_v5 }
 0x39a   :  { %3330 = vmatmul.mubr.msk.f32.gmra.mrb[14].mxu0 %vm383_vm5, %v1629_v27 }
 0x39b   :  { %3561 = vmatpush3.bf16.msra.mxu0 %v3558_v5  ;;  %3340 = vmatprep.mubr.msk.f32.mxu0 %vm383_vm5, %v1743_v21 }
 0x39e   :  { %3341 = vmatmul.mubr.msk.f32.vlgmr.msra.gmra.mrb[12].mxu0 %vm383_vm5, %v1744_v2 }
 0x39f   :  { %3343 = vmatprep.mubr.msk.f32.mxu0 %vm383_vm5, %v1745_v34 }
 0x3a2   :  { %3344 = vmatmul.mubr.msk.f32.gmra.mrb[14].mxu0 %vm383_vm5, %v1746_v16 }
 0x471   :  { %v3342_v43 = vpop.f32.mrb[12].mxu0 }
 0x472   :  { %v3638_v52 = vadd.f32 %v3342_v43, %v2940_v25  ;;  %v1829_v41 = vpop.f32.mrb[13].mxu0 }
 0x473   :  { %v3639_v59 = vadd.f32 %v2940_v25, %v1829_v41 }
 0x474   :  { %vm1853_vm10 = vcmp.ge.f32.partialorder %v3638_v52, 0.0  ;;  %v1857_v60 = vmul.f32 %v3638_v52, %v4104_v4 }
 0x475   :  { %vm1852_vm11 = vcmp.ge.f32.partialorder %v3639_v59, 0.0  ;;  %v1856_v63 = vmul.f32 %v3639_v59, %v4104_v4  ;;  %v3345_v48 = vpop.f32.mrb[14].mxu0 }
 0x476   :  { %v4347_v1 = vsel %vm1853_vm10, %v3638_v52, %v1857_v60  ;;  %v3640_v3 = vadd.f32 %v3345_v48, %v2940_v25  ;;  %v1839_v54 = vpop.f32.mrb[15].mxu0 }
 0x477   :  { %v1865_v0 = vrot.slane %v4347_v1, 7  ;;  %v1885_v17 = vrot.slane %v4347_v1, 1  ;;  %v4351_v26 = vsel %vm1852_vm11, %v3639_v59, %v1856_v63  ;;  %v3641_v57 = vadd.f32 %v2940_v25, %v1839_v54 }
 0x478   :  { %vm1855_vm12 = vcmp.ge.f32.partialorder %v3640_v3, 0.0  ;;  %v1859_v47 = vmul.f32 %v3640_v3, %v4104_v4  ;;  %v1877_v45 = vmul.f32 %v4347_v1, %v3847_v36  ;;  %v1897_v8 = vmul.f32 %v4347_v1, %v3857_v42 }
 0x479   :  { %v1864_v14 = vrot.slane %v4351_v26, 7  ;;  %v1884_v10 = vrot.slane %v4351_v26, 1  ;;  %vm1854_vm13 = vcmp.ge.f32.partialorder %v3641_v57, 0.0  ;;  %v1858_v7 = vmul.f32 %v3641_v57, %v4104_v4 }
 0x47a   :  { %v1863_v22 = vsel %vm1855_vm12, %v3640_v3, %v1859_v47  ;;  %v1876_v5 = vmul.f32 %v4351_v26, %v3838_v29  ;;  %v1896_v16 = vmul.f32 %v4351_v26, %v3836_v28 }
 0x47b   :  { %v1870_v20 = vsel %vm42_vm0, %v1864_v14, %v1865_v0  ;;  %v1867_v27 = vrot.slane %v1863_v22, 7  ;;  %v1887_v21 = vrot.slane %v1863_v22, 1  ;;  %v1890_v36 = vsel %vm103_vm1, %v1884_v10, %v1885_v17 }
 0x47c   :  { %v1873_v42 = vmul.f32 %v1870_v20, %v3845_v35  ;;  %v1862_v2 = vsel %vm1854_vm13, %v3641_v57, %v1858_v7  ;;  %v1892_v34 = vmul.f32 %v1890_v36, %v3827_v23  ;;  %v1879_v60 = vmul.f32 %v1863_v22, %v3891_v6  ;;  %v1915_v6 = vld [vmem:[%s4602_s1 + $0x1c8] sm:$0xff]  ;;  %v2136_v36 = vld [vmem:[%s4602_s1 + $0x1f8] sm:$0xff] }
 0x47d   :  { %v1866_v30 = vrot.slane %v1862_v2, 7  ;;  %v1886_v38 = vrot.slane %v1862_v2, 1  ;;  %v1871_v29 = vsel %vm42_vm0, %v1867_v27, %v1864_v14  ;;  %v1878_v37 = vmul.f32 %v1862_v2, %v3850_v39 }
 0x47e   :  { %v1872_v15 = vmul.f32 %v1871_v29, %v3829_v24  ;;  %v1900_v49 = vadd.f32 %v1896_v16, %v1892_v34  ;;  %v1881_v53 = vadd.f32 %v1877_v45, %v1873_v42  ;;  %v1898_v58 = vmul.f32 %v1862_v2, %v3883_v62  ;;  %v1914_v45 = vld [vmem:[%s4602_s1 + $0x1c0] sm:$0xff] }
 0x47f   :  { %v1889_v55 = vsel %vm103_vm1, %v1885_v17, %v1886_v38  ;;  %v1869_v25 = vsel %vm42_vm0, %v1865_v0, %v1866_v30  ;;  %v1888_v28 = vsel %vm103_vm1, %v1886_v38, %v1887_v21  ;;  %v1868_v43 = vsel %vm42_vm0, %v1866_v30, %v1867_v27  ;;  %v2258_v34 = vld [vmem:[%s4602_s1 + $0x220] sm:$0xff]  ;;  %v2965_v30 = vld [vmem:[%s4602_s1 + $0x1f0] ss:$0 sm:$0xff] }
 0x480   :  { %v1893_v39 = vmul.f32 %v1889_v55, %v3870_v50  ;;  %v1880_v52 = vadd.f32 %v1876_v5, %v1872_v15  ;;  %v1874_v41 = vmul.f32 %v1869_v25, %v3863_v46  ;;  %v1894_v59 = vmul.f32 %v1888_v28, %v3876_v56 }
 0x481   :  { %v1875_v62 = vmul.f32 %v1868_v43, %v3859_v44  ;;  %v1891_v63 = vsel %vm103_vm1, %v1887_v21, %v1884_v10  ;;  %v1899_v57 = vmul.f32 %v1863_v22, %v3902_v13  ;;  %v3574_v27 = vpack.c.bf16 %v1915_v6, %v1914_v45 }
 0x482   :  { %v1904_v48 = vmax.f32 %v1880_v52, %v1900_v49  ;;  %v1901_v3 = vadd.f32 %v1897_v8, %v1893_v39  ;;  %v1882_v54 = vadd.f32 %v1878_v37, %v1874_v41  ;;  %v1902_v0 = vadd.f32 %v1898_v58, %v1894_v59  ;;  %v2260_v58 = vld [vmem:[%s4602_s1 + $0x230] sm:$0xff] }
 0x483   :  { %v1883_v17 = vadd.f32 %v1879_v60, %v1875_v62  ;;  %v1895_v47 = vmul.f32 %v1891_v63, %v3895_v9 }
 0x484   :  { %v1908_v14 = vmax.f32 %v4351_v26, %v1904_v48  ;;  %v1905_v10 = vmax.f32 %v1881_v53, %v1901_v3  ;;  %v1906_v7 = vmax.f32 %v1882_v54, %v1902_v0  ;;  %v2259_v53 = vld [vmem:[%s4602_s1 + $0x228] sm:$0xff] }
 0x485   :  { %v1903_v8 = vadd.f32 %v1899_v57, %v1895_v47  ;;  %v3590_v59 = vpack.c.bf16 %v2260_v58, %v2259_v53  ;;  %v2375_v47 = vld [vmem:[%s4602_s1 + $0x240] sm:$0xff] }
 0x486   :  { %3354 = vmatprep.mubr.msk.f32.mxu1 %vm383_vm5, %v1908_v14  ;;  %v1909_v5 = vmax.f32 %v4347_v1, %v1905_v10  ;;  %v1910_v20 = vmax.f32 %v1862_v2, %v1906_v7 }
 0x487   :  { %v1907_v13 = vmax.f32 %v1883_v17, %v1903_v8  ;;  %v2374_v17 = vld [vmem:[%s4602_s1 + $0x238] sm:$0xff] }
 0x488   :  { %3355 = vmatmul.mubr.msk.f32.vlgmr.msra.gmra.mrb[4].mxu1 %vm383_vm5, %v1909_v5 }
 0x489   :  { %3357 = vmatprep.mubr.msk.f32.mxu1 %vm383_vm5, %v1910_v20  ;;  %3573 = vmatpush3.bf16.msra.mxu1 %v4339_v51  ;;  %v1911_v21 = vmax.f32 %v1863_v22, %v1907_v13  ;;  %v2137_v51 = vld [vmem:[%s4602_s1 + $0x200] sm:$0xff]  ;;  %v3594_v20 = vpack.c.bf16 %v2375_v47, %v2374_v17  ;;  %v2611_v17 = vld [vmem:[%s4602_s1 + $0x290] sm:$0xff] }
 0x48a   :  { %3575 = vmatprep.subr.bf16.mxu1 %v3574_v27  ;;  %v3578_v42 = vpack.c.bf16 %v2137_v51, %v2136_v36 }
 0x48c   :  { %3358 = vmatmul.mubr.msk.f32.gmra.mrb[6].mxu1 %vm383_vm5, %v1911_v21 }
 0x48d   :  { %3577 = vmatpush3.bf16.msra.mxu1 %v3574_v27  ;;  %3368 = vmatprep.mubr.msk.f32.mxu1 %vm383_vm5, %v4351_v26  ;;  %v2138_v26 = vld [vmem:[%s4602_s1 + $0x208] sm:$0xff] }
 0x48e   :  { %3579 = vmatprep.subr.bf16.mxu1 %v3578_v42 }
 0x490   :  { %3369 = vmatmul.mubr.msk.f32.vlgmr.msra.gmra.mrb[4].mxu1 %vm383_vm5, %v4347_v1  ;;  %v2139_v1 = vld [vmem:[%s4602_s1 + $0x210] sm:$0xff] }
 0x491   :  { %3371 = vmatprep.mubr.msk.f32.mxu1 %vm383_vm5, %v1862_v2  ;;  %3581 = vmatpush3.bf16.msra.mxu1 %v3578_v42  ;;  %v2257_v2 = vld [vmem:[%s4602_s1 + $0x218] sm:$0xff] }
 0x492   :  { %v3586_v16 = vpack.c.bf16 %v2258_v34, %v2257_v2  ;;  %v2377_v2 = vld [vmem:[%s4602_s1 + $0x250] sm:$0xff] }
 0x494   :  { %3372 = vmatmul.mubr.msk.f32.gmra.mrb[6].mxu1 %vm383_vm5, %v1863_v22  ;;  %v3582_v22 = vpack.c.bf16 %v2139_v1, %v2138_v26 }
 0x496   :  { %3583 = vmatprep.subr.bf16.mxu1 %v3582_v22 }
 0x497   :  { %3585 = vmatpush3.bf16.msra.mxu1 %v3582_v22  ;;  %v2376_v22 = vld [vmem:[%s4602_s1 + $0x248] sm:$0xff] }
 0x498   :  { %3587 = vmatprep.subr.bf16.mxu1 %v3586_v16  ;;  %v3598_v58 = vpack.c.bf16 %v2377_v2, %v2376_v22  ;;  %v2799_v2 = vld [vmem:[%s4602_s1 + $0x2a0] sm:$0xff] }
 0x563   :  { %v3370_v38 = vpop.f32.mrb[4].mxu1 }
 0x564   :  { %v2120_v29 = vadd.f32 %v3370_v38, %v2965_v30  ;;  %v2095_v37 = vpop.f32.mrb[5].mxu1 }
 0x565   :  { %v2119_v15 = vadd.f32 %v2965_v30, %v2095_v37 }
 0x566   :  { %vm2124_vm14 = vcmp.ge.f32.partialorder %v2120_v29, 0.0  ;;  %v2128_v49 = vmul.f32 0.02, %v2120_v29 }
 0x567   :  { %vm2123_vm15 = vcmp.ge.f32.partialorder %v2119_v15, 0.0  ;;  %v2127_v55 = vmul.f32 0.02, %v2119_v15  ;;  %v3373_v25 = vpop.f32.mrb[6].mxu1 }
 0x568   :  { %v4439_v28 = vsel %vm2124_vm14, %v2120_v29, %v2128_v49  ;;  %v2122_v43 = vadd.f32 %v3373_v25, %v2965_v30  ;;  %v2105_v39 = vpop.f32.mrb[7].mxu1  ;;  %v2492_v25 = vld [vmem:[%s4602_s1 + $0x260] sm:$0xff] }
 0x569   :  { %v2246_v52 = vrot.slane %v4439_v28, 7  ;;  %v2480_v41 = vrot.slane %v4439_v28, 6  ;;  %v4443_v62 = vsel %vm2123_vm15, %v2119_v15, %v2127_v55  ;;  %v2121_v63 = vadd.f32 %v2965_v30, %v2105_v39  ;;  %v2491_v55 = vld [vmem:[%s4602_s1 + $0x258] sm:$0xff] }
 0x56a   :  { %vm2126_vm2 = vcmp.ge.f32.partialorder %v2122_v43, 0.0  ;;  %v2130_v60 = vmul.f32 0.02, %v2122_v43  ;;  %v2363_v48 = vrot.slane %v4439_v28, 1  ;;  %v2245_v3 = vrot.slane %v4443_v62, 7  ;;  %3382 = vmatprep.mubr.msk.f32.mxu1 %vm383_vm5, %v4443_v62 }
 0x56b   :  { %v2362_v54 = vrot.slane %v4443_v62, 1  ;;  %v2479_v0 = vrot.slane %v4443_v62, 6  ;;  %vm2125_vm3 = vcmp.ge.f32.partialorder %v2121_v63, 0.0  ;;  %v2129_v45 = vmul.f32 0.02, %v2121_v63  ;;  %3383 = vmatmul.mubr.msk.f32.vlgmr.msra.gmra.mrb[8].mxu1 %vm383_vm5, %v4439_v28 }
 0x56c   :  { %v2134_v57 = vsel %vm2126_vm2, %v2122_v43, %v2130_v60  ;;  %v2251_v6 = vsel %vm42_vm0, %v2245_v3, %v2246_v52  ;;  %3589 = vmatpush3.bf16.msra.mxu1 %v3586_v16  ;;  %v2597_v8 = vrot.slane %v4439_v28, 2  ;;  %v2596_v34 = vrot.slane %v4443_v62, 2  ;;  %v2493_v60 = vld [vmem:[%s4602_s1 + $0x268] sm:$0xff] }
 0x56d   :  { %v4463_v14 = vsel %vm727_vm6, %v2479_v0, %v2480_v41  ;;  %v2248_v10 = vrot.slane %v2134_v57, 7  ;;  %v2365_v7 = vrot.slane %v2134_v57, 1  ;;  %v2482_v5 = vrot.slane %v2134_v57, 6  ;;  %3591 = vmatprep.subr.bf16.mxu1 %v3590_v59 }
 0x56e   :  { %v2133_v27 = vsel %vm2125_vm3, %v2121_v63, %v2129_v45  ;;  %v2368_v21 = vsel %vm103_vm1, %v2362_v54, %v2363_v48  ;;  %v2599_v16 = vrot.slane %v2134_v57, 2  ;;  %v2254_v53 = vmul.f32 %v2251_v6, %v3845_v35  ;;  %v2494_v63 = vld [vmem:[%s4602_s1 + $0x270] sm:$0xff] }
 0x56f   :  { %v2252_v13 = vsel %vm42_vm0, %v2248_v10, %v2245_v3  ;;  %v2369_v36 = vsel %vm103_vm1, %v2365_v7, %v2362_v54  ;;  %v2247_v51 = vrot.slane %v2133_v27, 7  ;;  %v2364_v42 = vrot.slane %v2133_v27, 1  ;;  %3385 = vmatprep.mubr.msk.f32.mxu1 %vm383_vm5, %v2133_v27  ;;  %v2609_v3 = vld [vmem:[%s4602_s1 + $0x280] sm:$0xff] }
 0x570   :  { %v2481_v26 = vrot.slane %v2133_v27, 6  ;;  %v2598_v1 = vrot.slane %v2133_v27, 2  ;;  %3386 = vmatmul.mubr.msk.f32.gmra.mrb[10].mxu1 %vm383_vm5, %v2134_v57  ;;  %v2253_v30 = vmul.f32 %v2252_v13, %v3829_v24  ;;  %v2486_v38 = vsel %vm727_vm6, %v2482_v5, %v2479_v0 }
 0x571   :  { %v2367_v29 = vsel %vm103_vm1, %v2363_v48, %v2364_v42  ;;  %3593 = vmatpush3.bf16.msra.mxu1 %v3590_v59  ;;  %v2250_v15 = vsel %vm42_vm0, %v2246_v52, %v2247_v51  ;;  %v2249_v49 = vsel %vm42_vm0, %v2247_v51, %v2248_v10  ;;  %v2366_v28 = vsel %vm103_vm1, %v2364_v42, %v2365_v7 }
 0x572   :  { %v2601_v37 = vsel %vm861_vm7, %v2597_v8, %v2598_v1  ;;  %3396 = vmatprep.mubr.msk.f32.mxu1 %vm383_vm5, %v2253_v30  ;;  %3595 = vmatprep.subr.bf16.mxu1 %v3594_v20  ;;  %v2255_v24 = vmul.f32 %v2250_v15, %v3863_v46  ;;  %v2484_v35 = vsel %vm727_vm6, %v2480_v41, %v2481_v26  ;;  %vm3754_vm0 = vmmov 0   ;;  %v2725_v30 = vld [vmem:[%s4604_s3] sm:$0x3] }
 0x573   :  { %v2483_v46 = vsel %vm727_vm6, %v2481_v26, %v2482_v5  ;;  %v2602_v43 = vsel %vm861_vm7, %v2596_v34, %v2597_v8  ;;  %v2600_v39 = vsel %vm861_vm7, %v2598_v1, %v2599_v16  ;;  %v2256_v52 = vmul.f32 %v2249_v49, %v3859_v44 }
 0x574   :  { %3397 = vmatmul.mubr.msk.f32.vlgmr.msra.gmra.mrb[8].mxu1 %vm383_vm5, %v2254_v53  ;;  %v3602_v59 = vpack.c.bf16 %v2492_v25, %v2491_v55  ;;  %v2603_v41 = vsel %vm861_vm7, %v2599_v16, %v2596_v34  ;;  %v2370_v62 = vmul.f32 %v2368_v21, %v3827_v23  ;;  %v2371_v44 = vmul.f32 %v2367_v29, %v3870_v50  ;;  %v2608_v23 = vld [vmem:[%s4602_s1 + $0x278] sm:$0xff]  ;;  %v2800_v34 = vld [vmem:[%s4602_s1 + $0x2a8] sm:$0xff]  ;;  %v2988_v53 = vld [vmem:[%s4602_s1 + $0x2c0] ss:$0 sm:$0xff] }
 0x575   :  { %3399 = vmatprep.mubr.msk.f32.mxu1 %vm383_vm5, %v2255_v24  ;;  %3597 = vmatpush3.bf16.msra.mxu1 %v3594_v20  ;;  %v3606_v18 = vpack.c.bf16 %v2494_v63, %v2493_v60  ;;  %v2372_v48 = vmul.f32 %v2366_v28, %v3876_v56  ;;  %v2373_v54 = vmul.f32 %v2369_v36, %v3895_v9  ;;  %v2610_v56 = vld [vmem:[%s4602_s1 + $0x288] sm:$0xff]  ;;  %v2802_v29 = vld [vmem:[%s4602_s1 + $0x2b8] sm:$0xff] }
 0x576   :  { %3599 = vmatprep.subr.bf16.mxu1 %v3598_v58  ;;  %v3610_v50 = vpack.c.bf16 %v2609_v3, %v2608_v23  ;;  %v2487_v0 = vmul.f32 %v2486_v38, %v3983_v33  ;;  %v2488_v9 = vmul.f32 %v4463_v14, %v4042_v19  ;;  %v3614_v47 = vpack.c.bf16 %v2611_v17, %v2610_v56 }
 0x577   :  { %v2489_v33 = vmul.f32 %v2484_v35, %v4016_v61  ;;  %v2490_v57 = vmul.f32 %v2483_v46, %v4038_v11  ;;  %v2604_v45 = vmul.f32 %v2602_v43, %v4059_v32  ;;  %v2605_v19 = vmul.f32 %v2601_v37, %v4056_v31  ;;  %v2970_v31 = vld [vmem:[%s4602_s1 + $0x298] ss:$0 sm:$0xff] }
 0x578   :  { %3400 = vmatmul.mubr.msk.f32.gmra.mrb[10].mxu1 %vm383_vm5, %v2256_v52  ;;  %v2606_v6 = vmul.f32 %v2600_v39, %v4066_v12  ;;  %v2607_v61 = vmul.f32 %v2603_v41, %v4071_v40  ;;  %v3753_v11 = vmov 0.0|0.0   ;;  %v3755_v32 = vmov 0.0  }
 0x579   :  { %3601 = vmatpush3.bf16.msra.mxu1 %v3598_v58  ;;  %3410 = vmatprep.mubr.msk.f32.mxu1 %vm383_vm5, %v2370_v62  ;;  %v3625_v38 = vpack.c.bf16 %v2800_v34, %v2799_v2 }
 0x57a   :  { %3603 = vmatprep.subr.bf16.mxu1 %v3602_v59  ;;  %3618 = vmatprep.subr.bf16.mxu0 %v3753_v11 }
 0x57b   :  { %3452 = vmatprep.mubr.msk.f32.mxu0 %vm3754_vm0, %v3755_v32 }
 0x57c   :  { %3411 = vmatmul.mubr.msk.f32.vlgmr.msra.gmra.mrb[8].mxu1 %vm383_vm5, %v2371_v44 }
 0x57d   :  { %3413 = vmatprep.mubr.msk.f32.mxu1 %vm383_vm5, %v2372_v48  ;;  %3605 = vmatpush3.bf16.msra.mxu1 %v3602_v59 }
 0x57e   :  { %3607 = vmatprep.subr.bf16.mxu1 %v3606_v18 }
 0x580   :  { %3414 = vmatmul.mubr.msk.f32.gmra.mrb[10].mxu1 %vm383_vm5, %v2373_v54 }
 0x581   :  { %3609 = vmatpush3.bf16.msra.mxu1 %v3606_v18  ;;  %3424 = vmatprep.mubr.msk.f32.mxu1 %vm383_vm5, %v2487_v0 }
 0x582   :  { %3611 = vmatprep.subr.bf16.mxu1 %v3610_v50 }
 0x584   :  { %3425 = vmatmul.mubr.msk.f32.vlgmr.msra.gmra.mrb[8].mxu1 %vm383_vm5, %v2488_v9 }
 0x585   :  { %3427 = vmatprep.mubr.msk.f32.mxu1 %vm383_vm5, %v2489_v33  ;;  %3613 = vmatpush3.bf16.msra.mxu1 %v3610_v50 }
 0x586   :  { %3615 = vmatprep.subr.bf16.mxu1 %v3614_v47 }
 0x588   :  { %3428 = vmatmul.mubr.msk.f32.gmra.mrb[10].mxu1 %vm383_vm5, %v2490_v57 }
 0x589   :  { %3617 = vmatpush3.bf16.msra.mxu1 %v3614_v47  ;;  %3438 = vmatprep.mubr.msk.f32.mxu1 %vm383_vm5, %v2604_v45 }
 0x58c   :  { %3439 = vmatmul.mubr.msk.f32.vlgmr.msra.gmra.mrb[8].mxu1 %vm383_vm5, %v2605_v19 }
 0x58d   :  { %3441 = vmatprep.mubr.msk.f32.mxu1 %vm383_vm5, %v2606_v6 }
 0x590   :  { %3442 = vmatmul.mubr.msk.f32.gmra.mrb[10].mxu1 %vm383_vm5, %v2607_v61 }
 0x65f   :  { %v3440_v14 = vpop.f32.mrb[8].mxu1 }
 0x660   :  { %v3642_v12 = vadd.f32 %v3440_v14, %v2970_v31  ;;  %v2690_v10 = vpop.f32.mrb[9].mxu1 }
 0x661   :  { %v3643_v7 = vadd.f32 %v2970_v31, %v2690_v10 }
 0x662   :  { %vm2714_vm1 = vcmp.ge.f32.partialorder %v3642_v12, 0.0  ;;  %v2718_v8 = vmul.f32 %v3642_v12, %v4104_v4 }
 0x663   :  { %vm2713_vm6 = vcmp.ge.f32.partialorder %v3643_v7, 0.0  ;;  %v2717_v40 = vmul.f32 %v3643_v7, %v4104_v4  ;;  %v3443_v5 = vpop.f32.mrb[10].mxu1 }
 0x664   :  { %v2722_v20 = vsel %vm2714_vm1, %v3642_v12, %v2718_v8  ;;  %v3644_v27 = vadd.f32 %v3443_v5, %v2970_v31  ;;  %v2700_v13 = vpop.f32.mrb[11].mxu1 }
 0x665   :  { %v2721_v21 = vsel %vm2713_vm6, %v3643_v7, %v2717_v40  ;;  %v3645_v36 = vadd.f32 %v2970_v31, %v2700_v13 }
 0x666   :  { %v3619_v51 = vpack.c.bf16 %v2722_v20, %v2721_v21  ;;  %vm2716_vm7 = vcmp.ge.f32.partialorder %v3644_v27, 0.0  ;;  %v2720_v42 = vmul.f32 %v3644_v27, %v4104_v4 }
 0x667   :  { %vm2715_vm4 = vcmp.ge.f32.partialorder %v3645_v36, 0.0  ;;  %v2719_v26 = vmul.f32 %v3645_v36, %v4104_v4  ;;  %v2801_v4 = vld [vmem:[%s4602_s1 + $0x2b0] sm:$0xff] }
 0x668   :  { %v2724_v1 = vsel %vm2716_vm7, %v3644_v27, %v2720_v42  ;;  %3620 = vmatpush3.bf16.msra.mxu0 %v3619_v51  ;;  %v3628_v37 = vpack.c.bf16 %v2802_v29, %v2801_v4 }
 0x669   :  { %v2723_v22 = vsel %vm2715_vm4, %v3645_v36, %v2719_v26  ;;  %3621 = vmatprep.subr.bf16.mxu0 %v3753_v11 }
 0x66a   :  { %v3622_v16 = vpack.c.bf16 %v2724_v1, %v2723_v22 }
 0x66c   :  { %3623 = vmatpush3.bf16.msra.mxu0 %v3622_v16 }
 0x66d   :  { %3624 = vmatprep.subr.bf16.mxu0 %v3753_v11 }
 0x66f   :  { %3453 = vmatmul.mubr.msk.f32.vlgmr.msra.gmra.mrb[16].mxu0 %vm383_vm5, %v2725_v30 }
 0x670   :  { %3626 = vmatpush3.bf16.msra.mxu0 %v3625_v38  ;;  %3463 = vmatprep.mubr.msk.f32.mxu0 %vm3754_vm0, %v3755_v32 }
 0x671   :  { %3627 = vmatprep.subr.bf16.mxu0 %v3753_v11 }
 0x674   :  { %3629 = vmatpush3.bf16.msra.mxu0 %v3628_v37 }
 0x742   :  { %v2795_v15 = vpop.f32.mrb[16].mxu0 }
 0x743   :  { %v3454_v49 = vpop.f32.mrb[17].mxu0  ;;  %3464 = vmatmul.mubr.msk.f32.vlgmr.msra.gmra.mrb[18].mxu0 %vm383_vm5, %v2795_v15 }
 0x816   :  { %v2877_v24 = vpop.f32.mrb[18].mxu0 }
 0x817   :  { %v2878_v58 = vadd.f32 %v2988_v53, %v2877_v24  ;;  %v3465_v55 = vpop.f32.mrb[19].mxu0 }
 0x819   :  { %2882 = vst.msk [vmem:[#allocation2] sm:$0x3] %vm2881_vm8, %v2878_v58 }
 0x81a   :  { %3735 = shalt.err (!%p3732_p4)
}
 0x81b   :  { %s3736_s19 = scalar_lea.hbm %s4605_s4, 32 }
 0x81c   :  { %p3737_p5 = scmp.ne.s32.totalorder %s4605_s4, %s3736_s19  ;;  %p3740_p6 = scmp.lt.u32.totalorder %s3736_s19, %s4605_s4 }
 0x81e   :  { %p3742_p7 = pnand %p3740_p6, %p3737_p5 }
 0x820   :  { %3745 = shalt.err (!%p3742_p7)
}
 0x821   :  { %2892 = dma.vmem_to_hbm [thread:$0]  %s2890_s15, 32, %s4605_s4, [#allocation3]  }
 0x822   :  { %3746 = dma.done.wait [#allocation3], 32  }
 0x823   :  { %3747 = vsyncadd [#allocation3], 4294967264 }
 0x824   :  { %2896 = vsyncpa [#allocation3], 1 }

</bundles_post_ra>
